<compile_context>
chip_gen: v5e
topology: v5e:2x2
jax: 0.10.0
libtpu: 0.0.40
codegen_flags: <defaults>
</compile_context>

<pallas_src>
import jax
import jax.numpy as jnp
from jax.experimental import pallas as pl
from jax.experimental.pallas import tpu as pltpu

# hyperparameters that the PyTorch file pulls from module-level globals
LSTM_HIDDEN = 32        # lstm_hidding_dim
CLASSIFY_NUM = 4        # classfy_number
DROPOUT_P = 0.1         # dropout (identity in eval mode)


# ----------------------------------------------------------------------------
# Fused kernel: hoisted input projection + bidirectional LSTM recurrence +
# classification head.  Single grid point; time loop fully unrolled in-kernel.
# ----------------------------------------------------------------------------
def fused_bilstm_classify_kernel(x_ref, w_ih_ref, w_hh_ref, b_ref,
                                 h0_ref, c0_ref, wc_ref, bc_ref,
                                 log_ref, pred_ref, xg_sc, feat_sc):
    SB = x_ref.shape[0]            # S * B
    B, H2 = h0_ref.shape           # H2 = 2H  (combined fwd|bwd carry width)
    H = H2 // 2
    S = SB // B
    G6 = 6 * H                     # contiguous sigmoid-gate width (both dirs)

    # ---- hoisted: input projection for BOTH directions + bias, one MXU pass,
    #      completely off the serial h-dependency chain.
    #      x row block t already holds [x_t | x_{S-1-t}], so xg row block t is
    #      the full (B, 8H) input contribution needed at step t.
    xg_sc[...] = (jnp.dot(x_ref[...], w_ih_ref[...],
                          preferred_element_type=jnp.float32) + b_ref[...])

    w_hh = w_hh_ref[...]           # (2H, 8H) block-structured recurrent weight

    def step(t, carry):
        h, c = carry                                       # (B, 2H) each, [fwd|bwd]
        xg_t = xg_sc[pl.ds(t * B, B), :]                   # (B, 8H)

        # only the recurrent dot is on the serial critical path: K = 2H
        gates = jnp.dot(h, w_hh, preferred_element_type=jnp.float32) + xg_t

        # gate columns: [ i_f,i_b | f_f,f_b | o_f,o_b | g_f,g_b ]
        sg = jax.nn.sigmoid(gates[:, :G6])                 # 6H lanes through EUP
        g = jnp.tanh(gates[:, G6:])                        # 2H lanes through EUP
        i = sg[:, 0:H2]
        f = sg[:, H2:2 * H2]
        o = sg[:, 2 * H2:3 * H2]

        c = f * c + i * g                                  # both directions at once
        h = o * jnp.tanh(c)                                # single tanh(2H)

        # feature rows are (s, b)-major: row = s*B + b.
        # fwd hidden of time t      -> row block t,      lanes 0:H  (src off 0)
        # bwd hidden of pos (S-1-t) -> row block S-1-t,  lanes H:2H (src off H)
        # source/destination lane offsets match -> no per-step lane shift.
        feat_sc[pl.ds(t * B, B), 0:H] = h[:, 0:H]
        feat_sc[pl.ds((S - 1 - t) * B, B), H:H2] = h[:, H:H2]
        return h, c

    jax.lax.fori_loop(0, S, step, (h0_ref[...], c0_ref[...]), unroll=True)

    # ---- classification head epilogue on the resident (S*B, 2H) features ----
    feats = feat_sc[...]
    scores = (jnp.dot(feats, wc_ref[...], preferred_element_type=jnp.float32)
              + bc_ref[...])                               # (S*B, C)
    m = jnp.max(scores, axis=-1, keepdims=True)
    shifted = scores - m
    lse = jnp.log(jnp.sum(jnp.exp(shifted), axis=-1, keepdims=True))
    log_ref[...] = shifted - lse                           # log_softmax

    # torch.max(softmax(x), -1)[1] == argmax(x, -1); first-index tie-break.
    C = scores.shape[-1]
    idx = jax.lax.broadcasted_iota(jnp.int32, scores.shape, 1)
    pred_ref[...] = jnp.min(jnp.where(scores >= m, idx, C), axis=-1,
                            keepdims=True)


def run_fused_model(x_cat, w_ih, w_hh, b_all, h0c, c0c, w_cls, b_cls):
    """x_cat: (S*B, 2E) rows = [x_t | x_{S-1-t}];  returns ((S*B,C), (S*B,1))."""
    SB = x_cat.shape[0]
    H2 = h0c.shape[-1]                       # 2H
    C = w_cls.shape[-1]
    return pl.pallas_call(
        fused_bilstm_classify_kernel,
        out_shape=(jax.ShapeDtypeStruct((SB, C), jnp.float32),
                   jax.ShapeDtypeStruct((SB, 1), jnp.int32)),
        in_specs=[pl.BlockSpec(memory_space=pltpu.MemorySpace.VMEM)] * 8,
        out_specs=(pl.BlockSpec(memory_space=pltpu.MemorySpace.VMEM),
                   pl.BlockSpec(memory_space=pltpu.MemorySpace.VMEM)),
        scratch_shapes=[pltpu.VMEM((SB, 4 * H2), jnp.float32),   # xg (S*B, 8H)
                        pltpu.VMEM((SB, H2), jnp.float32)],      # feats (S*B, 2H)
    )(x_cat, w_ih, w_hh, b_all, h0c, c0c, w_cls, b_cls)


# ----------------------------------------------------------------------------
# Full forward pass (mirrors LSTM.forward)
# ----------------------------------------------------------------------------
def lstm_model_forward(params, ids, h0, c0):
    # Embedding lookup (frozen, from_pretrained) — gather is glue, plain JAX.
    # Gather straight into time-major order, plus the time-reversed copy so
    # each kernel row already carries both directions' inputs.
    emb = params["emb"]
    x_f = emb[ids.T].astype(jnp.float32)              # (S, B, E): fwd reads t
    x_b = emb[ids[:, ::-1].T].astype(jnp.float32)     # (S, B, E): bwd reads S-1-t
    # TODO(synk): nn.Dropout is identity in eval mode; training-mode dropout
    # (random masking) is not applied here.
    S, B, E = x_f.shape
    x_cat = jnp.concatenate([x_f, x_b], axis=-1).reshape(S * B, 2 * E)

    # combined [fwd | bwd] initial states, built once outside the kernel
    h0c = jnp.concatenate([h0[0], h0[1]], axis=-1)    # (B, 2H)
    c0c = jnp.concatenate([c0[0], c0[1]], axis=-1)    # (B, 2H)

    C = params["w_cls"].shape[-1]
    log_flat, pred_flat = run_fused_model(
        x_cat, params["w_ih"], params["w_hh"], params["b_all"],
        h0c, c0c, params["w_cls"], params["b_cls"])

    # tiny (S*B, C)/(S*B, 1) tensors -> batch-first layout, negligible XLA glue
    scores_log = jnp.transpose(log_flat.reshape(S, B, C), (1, 0, 2))  # (B,S,C)
    predict = pred_flat.reshape(S, B).T                                # (B,S)
    return scores_log, predict


# ----------------------------------------------------------------------------
# Deterministic parameter construction
# ----------------------------------------------------------------------------
def _place_gates(w, d, H):
    """w: (K, 4H) with columns in torch order [i, f, g, o] for one direction.
    Returns (K, 8H) in the fused layout [i_f,i_b | f_f,f_b | o_f,o_b | g_f,g_b]
    for direction d (0=fwd, 1=bwd): sigmoid gates contiguous in 0:6H, tanh 'g'
    gates contiguous in 6H:8H, and within each gate block fwd|bwd lanes match
    the (B, 2H) carry layout."""
    K = w.shape[0]
    i, f, g, o = w[:, 0:H], w[:, H:2 * H], w[:, 2 * H:3 * H], w[:, 3 * H:4 * H]
    out = jnp.zeros((K, 8 * H), jnp.float32)
    out = out.at[:, 0 * 2 * H + d * H: 0 * 2 * H + (d + 1) * H].set(i)
    out = out.at[:, 1 * 2 * H + d * H: 1 * 2 * H + (d + 1) * H].set(f)
    out = out.at[:, 2 * 2 * H + d * H: 2 * 2 * H + (d + 1) * H].set(o)
    out = out.at[:, 3 * 2 * H + d * H: 3 * 2 * H + (d + 1) * H].set(g)
    return out


def make_params(key, vocab_size, E, H, C):
    ks = jax.random.split(key, 12)
    scale = 1.0 / jnp.sqrt(H)
    u = lambda k, s: jax.random.uniform(k, s, jnp.float32, -scale, scale)

    # per-direction weights, stored transposed vs torch: (in_dim, 4H), cols [i,f,g,o]
    w_ih_f = u(ks[1], (E, 4 * H)); w_hh_f = u(ks[2], (H, 4 * H))
    b_ih_f = u(ks[3], (1, 4 * H)); b_hh_f = u(ks[4], (1, 4 * H))
    w_ih_b = u(ks[5], (E, 4 * H)); w_hh_b = u(ks[6], (H, 4 * H))
    b_ih_b = u(ks[7], (1, 4 * H)); b_hh_b = u(ks[8], (1, 4 * H))

    # fused, gate-grouped layouts used by the kernel
    w_ih = jnp.concatenate([_place_gates(w_ih_f, 0, H),          # rows 0:E  -> x_t
                            _place_gates(w_ih_b, 1, H)], axis=0)  # rows E:2E -> x_{S-1-t}
    w_hh = jnp.concatenate([_place_gates(w_hh_f, 0, H),          # rows 0:H  -> h_f
                            _place_gates(w_hh_b, 1, H)], axis=0)  # rows H:2H -> h_b
    b_all = (_place_gates(b_ih_f + b_hh_f, 0, H)
             + _place_gates(b_ih_b + b_hh_b, 1, H))               # (1, 8H)

    cls_scale = 1.0 / jnp.sqrt(2 * H)
    w_cls = jax.random.uniform(ks[9], (2 * H, C), jnp.float32, -cls_scale, cls_scale)
    b_cls = jax.random.uniform(ks[10], (1, C), jnp.float32, -cls_scale, cls_scale)
    emb = jax.random.normal(ks[0], (vocab_size, E), jnp.float32)

    params = {"emb": emb, "w_ih": w_ih, "w_hh": w_hh, "b_all": b_all,
              "w_cls": w_cls, "b_cls": b_cls}
    raw = {"emb": emb,
           "w_ih_f": w_ih_f, "w_hh_f": w_hh_f, "b_f": b_ih_f + b_hh_f,
           "w_ih_b": w_ih_b, "w_hh_b": w_hh_b, "b_b": b_ih_b + b_hh_b,
           "w_cls": w_cls, "b_cls": b_cls}
    return params, raw


def xavier_uniform(key, shape):
    # matches torch.nn.init.xavier_uniform_ for a 3D (2, B, H) tensor
    fan_out = shape[0] * shape[2]
    fan_in = shape[1] * shape[2]
    bound = jnp.sqrt(6.0 / (fan_in + fan_out))
    return jax.random.uniform(key, shape, jnp.float32, -bound, bound)


# ----------------------------------------------------------------------------
# Pure-JAX reference (per-direction, torch gate order) for correctness check
# ----------------------------------------------------------------------------
def reference_forward(raw, ids, h0, c0):
    x = raw["emb"][ids].astype(jnp.float32)              # (B, S, E)
    B, S, _ = x.shape
    H = raw["w_hh_f"].shape[0]

    def run_dir(w_ih, w_hh, b, h, c, reverse):
        order = range(S - 1, -1, -1) if reverse else range(S)
        outs = [None] * S
        for t in order:
            g = x[:, t] @ w_ih + h @ w_hh + b             # (B, 4H) [i,f,g,o]
            i = jax.nn.sigmoid(g[:, 0:H])
            f = jax.nn.sigmoid(g[:, H:2 * H])
            gg = jnp.tanh(g[:, 2 * H:3 * H])
            o = jax.nn.sigmoid(g[:, 3 * H:4 * H])
            c = f * c + i * gg
            h = o * jnp.tanh(c)
            outs[t] = h
        return jnp.stack(outs, axis=1)                    # (B, S, H)

    out_f = run_dir(raw["w_ih_f"], raw["w_hh_f"], raw["b_f"], h0[0], c0[0], False)
    out_b = run_dir(raw["w_ih_b"], raw["w_hh_b"], raw["b_b"], h0[1], c0[1], True)
    feats = jnp.concatenate([out_f, out_b], axis=-1)      # (B, S, 2H)
    scores = feats @ raw["w_cls"] + raw["b_cls"]          # (B, S, C)
    return jax.nn.log_softmax(scores, axis=-1), jnp.argmax(scores, axis=-1)


if __name__ == "__main__":
    vocab_size, E, H, C = 100, 32, LSTM_HIDDEN, CLASSIFY_NUM
    B, S = 2, 8

    root = jax.random.PRNGKey(0)
    k_param, k_ids, k_h, k_c = jax.random.split(root, 4)

    params, raw = make_params(k_param, vocab_size, E, H, C)
    input_words_ids = jax.random.randint(k_ids, (B, S), 0, vocab_size,
                                         dtype=jnp.int32)
    # The torch module draws h0/c0 via randn + xavier_uniform_ every forward;
    # we draw them deterministically from the PRNG key instead.
    hidden_state = xavier_uniform(k_h, (2, B, H))
    cell_state = xavier_uniform(k_c, (2, B, H))

    forward = jax.jit(lstm_model_forward)
    scores_log, predict = forward(params, input_words_ids,
                                  hidden_state, cell_state)
    jax.block_until_ready((scores_log, predict))

    assert scores_log.shape == (B, S, C)
    assert predict.shape == (B, S)
    # log_softmax rows must sum to ~1 in prob space
    assert jnp.allclose(jnp.sum(jnp.exp(scores_log), axis=-1), 1.0, atol=1e-4)

    # compare against the pure-JAX bidirectional-LSTM reference
    ref_log, ref_pred = reference_forward(raw, input_words_ids,
                                          hidden_state, cell_state)
    assert jnp.allclose(scores_log, ref_log, atol=1e-3), "log-prob mismatch"
    assert jnp.array_equal(predict.astype(jnp.int32), ref_pred.astype(jnp.int32))

    print("KERNEL_OK")
</pallas_src>

<mosaic_0001>
module attributes {stable_mosaic.version = 11 : i64} {
  func.func @fused_bilstm_classify_kernel(%arg0: memref<16x64xf32, #tpu.memory_space<vmem>>, %arg1: memref<64x256xf32, #tpu.memory_space<vmem>>, %arg2: memref<64x256xf32, #tpu.memory_space<vmem>>, %arg3: memref<1x256xf32, #tpu.memory_space<vmem>>, %arg4: memref<2x64xf32, #tpu.memory_space<vmem>>, %arg5: memref<2x64xf32, #tpu.memory_space<vmem>>, %arg6: memref<64x4xf32, #tpu.memory_space<vmem>>, %arg7: memref<1x4xf32, #tpu.memory_space<vmem>>, %arg8: memref<16x4xf32, #tpu.memory_space<vmem>>, %arg9: memref<16x1xi32, #tpu.memory_space<vmem>>, %arg10: memref<16x256xf32, #tpu.memory_space<vmem>>, %arg11: memref<16x64xf32, #tpu.memory_space<vmem>>) attributes {dimension_semantics = [], scalar_prefetch = 0 : i64, scratch_operands = 2 : i64, tpu.core_type = #tpu.core_type<tc>} {
    %c0 = arith.constant 0 : index
    %c0_0 = arith.constant 0 : index
    %0 = vector.load %arg0[%c0, %c0_0] : memref<16x64xf32, #tpu.memory_space<vmem>>, vector<16x64xf32>
    %c0_1 = arith.constant 0 : index
    %c0_2 = arith.constant 0 : index
    %1 = vector.load %arg1[%c0_1, %c0_2] : memref<64x256xf32, #tpu.memory_space<vmem>>, vector<64x256xf32>
    %cst = arith.constant dense<0.000000e+00> : vector<16x256xf32>
    %2 = tpu.matmul %0, %1, %cst {dimension_numbers = #tpu.dot_dimension_numbers<[1], [0], [0], [1], [0, 0, 1, 1], [], []>} : vector<16x64xf32>, vector<64x256xf32>, vector<16x256xf32> -> vector<16x256xf32>
    %c0_3 = arith.constant 0 : index
    %c0_4 = arith.constant 0 : index
    %3 = vector.load %arg3[%c0_3, %c0_4] : memref<1x256xf32, #tpu.memory_space<vmem>>, vector<1x256xf32>
    %4 = vector.broadcast %3 : vector<1x256xf32> to vector<16x256xf32>
    %5 = arith.addf %2, %4 : vector<16x256xf32>
    %c0_5 = arith.constant 0 : index
    %c0_6 = arith.constant 0 : index
    %6 = vector.load %arg10[%c0_5, %c0_6] : memref<16x256xf32, #tpu.memory_space<vmem>>, vector<16x256xf32>
    tpu.vector_store %arg10[%c0_5, %c0_6], %5 {strides = array<i32>} : memref<16x256xf32, #tpu.memory_space<vmem>>, vector<16x256xf32>,
    %c0_7 = arith.constant 0 : index
    %c0_8 = arith.constant 0 : index
    %7 = vector.load %arg2[%c0_7, %c0_8] : memref<64x256xf32, #tpu.memory_space<vmem>>, vector<64x256xf32>
    %c0_9 = arith.constant 0 : index
    %c0_10 = arith.constant 0 : index
    %8 = vector.load %arg4[%c0_9, %c0_10] : memref<2x64xf32, #tpu.memory_space<vmem>>, vector<2x64xf32>
    %c0_11 = arith.constant 0 : index
    %c0_12 = arith.constant 0 : index
    %9 = vector.load %arg5[%c0_11, %c0_12] : memref<2x64xf32, #tpu.memory_space<vmem>>, vector<2x64xf32>
    %c0_i32 = arith.constant 0 : i32
    %c2_i32 = arith.constant 2 : i32
    %10 = arith.muli %c0_i32, %c2_i32 : i32
    %11 = arith.index_cast %10 : i32 to index
    %c0_13 = arith.constant 0 : index
    %12 = vector.load %arg10[%11, %c0_13] : memref<16x256xf32, #tpu.memory_space<vmem>>, vector<2x256xf32>
    %cst_14 = arith.constant dense<0.000000e+00> : vector<2x256xf32>
    %13 = tpu.matmul %8, %7, %cst_14 {dimension_numbers = #tpu.dot_dimension_numbers<[1], [0], [0], [1], [0, 0, 1, 1], [], []>} : vector<2x64xf32>, vector<64x256xf32>, vector<2x256xf32> -> vector<2x256xf32>
    %14 = arith.addf %13, %12 : vector<2x256xf32>
    %15 = vector.extract_strided_slice %14 {offsets = [0, 0], sizes = [2, 192], strides = [1, 1]} : vector<2x256xf32> to vector<2x192xf32>
    %16 = arith.negf %15 : vector<2x192xf32>
    %17 = math.exp %16 : vector<2x192xf32>
    %cst_15 = arith.constant 1.000000e+00 : f32
    %18 = vector.broadcast %cst_15 : f32 to vector<2x192xf32>
    %19 = arith.addf %18, %17 : vector<2x192xf32>
    %20 = arith.divf %18, %19 : vector<2x192xf32>
    %21 = vector.extract_strided_slice %14 {offsets = [0, 192], sizes = [2, 64], strides = [1, 1]} : vector<2x256xf32> to vector<2x64xf32>
    %22 = math.tanh %21 : vector<2x64xf32>
    %23 = vector.extract_strided_slice %20 {offsets = [0, 0], sizes = [2, 64], strides = [1, 1]} : vector<2x192xf32> to vector<2x64xf32>
    %24 = vector.extract_strided_slice %20 {offsets = [0, 64], sizes = [2, 64], strides = [1, 1]} : vector<2x192xf32> to vector<2x64xf32>
    %25 = vector.extract_strided_slice %20 {offsets = [0, 128], sizes = [2, 64], strides = [1, 1]} : vector<2x192xf32> to vector<2x64xf32>
    %26 = arith.mulf %24, %9 : vector<2x64xf32>
    %27 = arith.mulf %23, %22 : vector<2x64xf32>
    %28 = arith.addf %26, %27 : vector<2x64xf32>
    %29 = math.tanh %28 : vector<2x64xf32>
    %30 = arith.mulf %25, %29 : vector<2x64xf32>
    %31 = vector.extract_strided_slice %30 {offsets = [0, 0], sizes = [2, 32], strides = [1, 1]} : vector<2x64xf32> to vector<2x32xf32>
    %c2_i32_16 = arith.constant 2 : i32
    %32 = arith.muli %c0_i32, %c2_i32_16 : i32
    %33 = arith.index_cast %32 : i32 to index
    %c0_17 = arith.constant 0 : index
    %34 = vector.load %arg11[%33, %c0_17] : memref<16x64xf32, #tpu.memory_space<vmem>>, vector<2x32xf32>
    tpu.vector_store %arg11[%33, %c0_17], %31 {strides = array<i32>} : memref<16x64xf32, #tpu.memory_space<vmem>>, vector<2x32xf32>,
    %35 = vector.extract_strided_slice %30 {offsets = [0, 32], sizes = [2, 32], strides = [1, 1]} : vector<2x64xf32> to vector<2x32xf32>
    %c7_i32 = arith.constant 7 : i32
    %36 = arith.subi %c7_i32, %c0_i32 : i32
    %c2_i32_18 = arith.constant 2 : i32
    %37 = arith.muli %36, %c2_i32_18 : i32
    %38 = arith.index_cast %37 : i32 to index
    %c32 = arith.constant 32 : index
    %39 = vector.load %arg11[%38, %c32] : memref<16x64xf32, #tpu.memory_space<vmem>>, vector<2x32xf32>
    tpu.vector_store %arg11[%38, %c32], %35 {strides = array<i32>} : memref<16x64xf32, #tpu.memory_space<vmem>>, vector<2x32xf32>,
    %c1_i32 = arith.constant 1 : i32
    %c2_i32_19 = arith.constant 2 : i32
    %40 = arith.muli %c1_i32, %c2_i32_19 : i32
    %41 = arith.index_cast %40 : i32 to index
    %c0_20 = arith.constant 0 : index
    %42 = vector.load %arg10[%41, %c0_20] : memref<16x256xf32, #tpu.memory_space<vmem>>, vector<2x256xf32>
    %cst_21 = arith.constant dense<0.000000e+00> : vector<2x256xf32>
    %43 = tpu.matmul %30, %7, %cst_21 {dimension_numbers = #tpu.dot_dimension_numbers<[1], [0], [0], [1], [0, 0, 1, 1], [], []>} : vector<2x64xf32>, vector<64x256xf32>, vector<2x256xf32> -> vector<2x256xf32>
    %44 = arith.addf %43, %42 : vector<2x256xf32>
    %45 = vector.extract_strided_slice %44 {offsets = [0, 0], sizes = [2, 192], strides = [1, 1]} : vector<2x256xf32> to vector<2x192xf32>
    %46 = arith.negf %45 : vector<2x192xf32>
    %47 = math.exp %46 : vector<2x192xf32>
    %cst_22 = arith.constant 1.000000e+00 : f32
    %48 = vector.broadcast %cst_22 : f32 to vector<2x192xf32>
    %49 = arith.addf %48, %47 : vector<2x192xf32>
    %50 = arith.divf %48, %49 : vector<2x192xf32>
    %51 = vector.extract_strided_slice %44 {offsets = [0, 192], sizes = [2, 64], strides = [1, 1]} : vector<2x256xf32> to vector<2x64xf32>
    %52 = math.tanh %51 : vector<2x64xf32>
    %53 = vector.extract_strided_slice %50 {offsets = [0, 0], sizes = [2, 64], strides = [1, 1]} : vector<2x192xf32> to vector<2x64xf32>
    %54 = vector.extract_strided_slice %50 {offsets = [0, 64], sizes = [2, 64], strides = [1, 1]} : vector<2x192xf32> to vector<2x64xf32>
    %55 = vector.extract_strided_slice %50 {offsets = [0, 128], sizes = [2, 64], strides = [1, 1]} : vector<2x192xf32> to vector<2x64xf32>
    %56 = arith.mulf %54, %28 : vector<2x64xf32>
    %57 = arith.mulf %53, %52 : vector<2x64xf32>
    %58 = arith.addf %56, %57 : vector<2x64xf32>
    %59 = math.tanh %58 : vector<2x64xf32>
    %60 = arith.mulf %55, %59 : vector<2x64xf32>
    %61 = vector.extract_strided_slice %60 {offsets = [0, 0], sizes = [2, 32], strides = [1, 1]} : vector<2x64xf32> to vector<2x32xf32>
    %c2_i32_23 = arith.constant 2 : i32
    %62 = arith.muli %c1_i32, %c2_i32_23 : i32
    %63 = arith.index_cast %62 : i32 to index
    %c0_24 = arith.constant 0 : index
    %64 = vector.load %arg11[%63, %c0_24] : memref<16x64xf32, #tpu.memory_space<vmem>>, vector<2x32xf32>
    tpu.vector_store %arg11[%63, %c0_24], %61 {strides = array<i32>} : memref<16x64xf32, #tpu.memory_space<vmem>>, vector<2x32xf32>,
    %65 = vector.extract_strided_slice %60 {offsets = [0, 32], sizes = [2, 32], strides = [1, 1]} : vector<2x64xf32> to vector<2x32xf32>
    %c7_i32_25 = arith.constant 7 : i32
    %66 = arith.subi %c7_i32_25, %c1_i32 : i32
    %c2_i32_26 = arith.constant 2 : i32
    %67 = arith.muli %66, %c2_i32_26 : i32
    %68 = arith.index_cast %67 : i32 to index
    %c32_27 = arith.constant 32 : index
    %69 = vector.load %arg11[%68, %c32_27] : memref<16x64xf32, #tpu.memory_space<vmem>>, vector<2x32xf32>
    tpu.vector_store %arg11[%68, %c32_27], %65 {strides = array<i32>} : memref<16x64xf32, #tpu.memory_space<vmem>>, vector<2x32xf32>,
    %c2_i32_28 = arith.constant 2 : i32
    %c2_i32_29 = arith.constant 2 : i32
    %70 = arith.muli %c2_i32_28, %c2_i32_29 : i32
    %71 = arith.index_cast %70 : i32 to index
    %c0_30 = arith.constant 0 : index
    %72 = vector.load %arg10[%71, %c0_30] : memref<16x256xf32, #tpu.memory_space<vmem>>, vector<2x256xf32>
    %cst_31 = arith.constant dense<0.000000e+00> : vector<2x256xf32>
    %73 = tpu.matmul %60, %7, %cst_31 {dimension_numbers = #tpu.dot_dimension_numbers<[1], [0], [0], [1], [0, 0, 1, 1], [], []>} : vector<2x64xf32>, vector<64x256xf32>, vector<2x256xf32> -> vector<2x256xf32>
    %74 = arith.addf %73, %72 : vector<2x256xf32>
    %75 = vector.extract_strided_slice %74 {offsets = [0, 0], sizes = [2, 192], strides = [1, 1]} : vector<2x256xf32> to vector<2x192xf32>
    %76 = arith.negf %75 : vector<2x192xf32>
    %77 = math.exp %76 : vector<2x192xf32>
    %cst_32 = arith.constant 1.000000e+00 : f32
    %78 = vector.broadcast %cst_32 : f32 to vector<2x192xf32>
    %79 = arith.addf %78, %77 : vector<2x192xf32>
    %80 = arith.divf %78, %79 : vector<2x192xf32>
    %81 = vector.extract_strided_slice %74 {offsets = [0, 192], sizes = [2, 64], strides = [1, 1]} : vector<2x256xf32> to vector<2x64xf32>
    %82 = math.tanh %81 : vector<2x64xf32>
    %83 = vector.extract_strided_slice %80 {offsets = [0, 0], sizes = [2, 64], strides = [1, 1]} : vector<2x192xf32> to vector<2x64xf32>
    %84 = vector.extract_strided_slice %80 {offsets = [0, 64], sizes = [2, 64], strides = [1, 1]} : vector<2x192xf32> to vector<2x64xf32>
    %85 = vector.extract_strided_slice %80 {offsets = [0, 128], sizes = [2, 64], strides = [1, 1]} : vector<2x192xf32> to vector<2x64xf32>
    %86 = arith.mulf %84, %58 : vector<2x64xf32>
    %87 = arith.mulf %83, %82 : vector<2x64xf32>
    %88 = arith.addf %86, %87 : vector<2x64xf32>
    %89 = math.tanh %88 : vector<2x64xf32>
    %90 = arith.mulf %85, %89 : vector<2x64xf32>
    %91 = vector.extract_strided_slice %90 {offsets = [0, 0], sizes = [2, 32], strides = [1, 1]} : vector<2x64xf32> to vector<2x32xf32>
    %c2_i32_33 = arith.constant 2 : i32
    %92 = arith.muli %c2_i32_28, %c2_i32_33 : i32
    %93 = arith.index_cast %92 : i32 to index
    %c0_34 = arith.constant 0 : index
    %94 = vector.load %arg11[%93, %c0_34] : memref<16x64xf32, #tpu.memory_space<vmem>>, vector<2x32xf32>
    tpu.vector_store %arg11[%93, %c0_34], %91 {strides = array<i32>} : memref<16x64xf32, #tpu.memory_space<vmem>>, vector<2x32xf32>,
    %95 = vector.extract_strided_slice %90 {offsets = [0, 32], sizes = [2, 32], strides = [1, 1]} : vector<2x64xf32> to vector<2x32xf32>
    %c7_i32_35 = arith.constant 7 : i32
    %96 = arith.subi %c7_i32_35, %c2_i32_28 : i32
    %c2_i32_36 = arith.constant 2 : i32
    %97 = arith.muli %96, %c2_i32_36 : i32
    %98 = arith.index_cast %97 : i32 to index
    %c32_37 = arith.constant 32 : index
    %99 = vector.load %arg11[%98, %c32_37] : memref<16x64xf32, #tpu.memory_space<vmem>>, vector<2x32xf32>
    tpu.vector_store %arg11[%98, %c32_37], %95 {strides = array<i32>} : memref<16x64xf32, #tpu.memory_space<vmem>>, vector<2x32xf32>,
    %c3_i32 = arith.constant 3 : i32
    %c2_i32_38 = arith.constant 2 : i32
    %100 = arith.muli %c3_i32, %c2_i32_38 : i32
    %101 = arith.index_cast %100 : i32 to index
    %c0_39 = arith.constant 0 : index
    %102 = vector.load %arg10[%101, %c0_39] : memref<16x256xf32, #tpu.memory_space<vmem>>, vector<2x256xf32>
    %cst_40 = arith.constant dense<0.000000e+00> : vector<2x256xf32>
    %103 = tpu.matmul %90, %7, %cst_40 {dimension_numbers = #tpu.dot_dimension_numbers<[1], [0], [0], [1], [0, 0, 1, 1], [], []>} : vector<2x64xf32>, vector<64x256xf32>, vector<2x256xf32> -> vector<2x256xf32>
    %104 = arith.addf %103, %102 : vector<2x256xf32>
    %105 = vector.extract_strided_slice %104 {offsets = [0, 0], sizes = [2, 192], strides = [1, 1]} : vector<2x256xf32> to vector<2x192xf32>
    %106 = arith.negf %105 : vector<2x192xf32>
    %107 = math.exp %106 : vector<2x192xf32>
    %cst_41 = arith.constant 1.000000e+00 : f32
    %108 = vector.broadcast %cst_41 : f32 to vector<2x192xf32>
    %109 = arith.addf %108, %107 : vector<2x192xf32>
    %110 = arith.divf %108, %109 : vector<2x192xf32>
    %111 = vector.extract_strided_slice %104 {offsets = [0, 192], sizes = [2, 64], strides = [1, 1]} : vector<2x256xf32> to vector<2x64xf32>
    %112 = math.tanh %111 : vector<2x64xf32>
    %113 = vector.extract_strided_slice %110 {offsets = [0, 0], sizes = [2, 64], strides = [1, 1]} : vector<2x192xf32> to vector<2x64xf32>
    %114 = vector.extract_strided_slice %110 {offsets = [0, 64], sizes = [2, 64], strides = [1, 1]} : vector<2x192xf32> to vector<2x64xf32>
    %115 = vector.extract_strided_slice %110 {offsets = [0, 128], sizes = [2, 64], strides = [1, 1]} : vector<2x192xf32> to vector<2x64xf32>
    %116 = arith.mulf %114, %88 : vector<2x64xf32>
    %117 = arith.mulf %113, %112 : vector<2x64xf32>
    %118 = arith.addf %116, %117 : vector<2x64xf32>
    %119 = math.tanh %118 : vector<2x64xf32>
    %120 = arith.mulf %115, %119 : vector<2x64xf32>
    %121 = vector.extract_strided_slice %120 {offsets = [0, 0], sizes = [2, 32], strides = [1, 1]} : vector<2x64xf32> to vector<2x32xf32>
    %c2_i32_42 = arith.constant 2 : i32
    %122 = arith.muli %c3_i32, %c2_i32_42 : i32
    %123 = arith.index_cast %122 : i32 to index
    %c0_43 = arith.constant 0 : index
    %124 = vector.load %arg11[%123, %c0_43] : memref<16x64xf32, #tpu.memory_space<vmem>>, vector<2x32xf32>
    tpu.vector_store %arg11[%123, %c0_43], %121 {strides = array<i32>} : memref<16x64xf32, #tpu.memory_space<vmem>>, vector<2x32xf32>,
    %125 = vector.extract_strided_slice %120 {offsets = [0, 32], sizes = [2, 32], strides = [1, 1]} : vector<2x64xf32> to vector<2x32xf32>
    %c7_i32_44 = arith.constant 7 : i32
    %126 = arith.subi %c7_i32_44, %c3_i32 : i32
    %c2_i32_45 = arith.constant 2 : i32
    %127 = arith.muli %126, %c2_i32_45 : i32
    %128 = arith.index_cast %127 : i32 to index
    %c32_46 = arith.constant 32 : index
    %129 = vector.load %arg11[%128, %c32_46] : memref<16x64xf32, #tpu.memory_space<vmem>>, vector<2x32xf32>
    tpu.vector_store %arg11[%128, %c32_46], %125 {strides = array<i32>} : memref<16x64xf32, #tpu.memory_space<vmem>>, vector<2x32xf32>,
    %c4_i32 = arith.constant 4 : i32
    %c2_i32_47 = arith.constant 2 : i32
    %130 = arith.muli %c4_i32, %c2_i32_47 : i32
    %131 = arith.index_cast %130 : i32 to index
    %c0_48 = arith.constant 0 : index
    %132 = vector.load %arg10[%131, %c0_48] : memref<16x256xf32, #tpu.memory_space<vmem>>, vector<2x256xf32>
    %cst_49 = arith.constant dense<0.000000e+00> : vector<2x256xf32>
    %133 = tpu.matmul %120, %7, %cst_49 {dimension_numbers = #tpu.dot_dimension_numbers<[1], [0], [0], [1], [0, 0, 1, 1], [], []>} : vector<2x64xf32>, vector<64x256xf32>, vector<2x256xf32> -> vector<2x256xf32>
    %134 = arith.addf %133, %132 : vector<2x256xf32>
    %135 = vector.extract_strided_slice %134 {offsets = [0, 0], sizes = [2, 192], strides = [1, 1]} : vector<2x256xf32> to vector<2x192xf32>
    %136 = arith.negf %135 : vector<2x192xf32>
    %137 = math.exp %136 : vector<2x192xf32>
    %cst_50 = arith.constant 1.000000e+00 : f32
    %138 = vector.broadcast %cst_50 : f32 to vector<2x192xf32>
    %139 = arith.addf %138, %137 : vector<2x192xf32>
    %140 = arith.divf %138, %139 : vector<2x192xf32>
    %141 = vector.extract_strided_slice %134 {offsets = [0, 192], sizes = [2, 64], strides = [1, 1]} : vector<2x256xf32> to vector<2x64xf32>
    %142 = math.tanh %141 : vector<2x64xf32>
    %143 = vector.extract_strided_slice %140 {offsets = [0, 0], sizes = [2, 64], strides = [1, 1]} : vector<2x192xf32> to vector<2x64xf32>
    %144 = vector.extract_strided_slice %140 {offsets = [0, 64], sizes = [2, 64], strides = [1, 1]} : vector<2x192xf32> to vector<2x64xf32>
    %145 = vector.extract_strided_slice %140 {offsets = [0, 128], sizes = [2, 64], strides = [1, 1]} : vector<2x192xf32> to vector<2x64xf32>
    %146 = arith.mulf %144, %118 : vector<2x64xf32>
    %147 = arith.mulf %143, %142 : vector<2x64xf32>
    %148 = arith.addf %146, %147 : vector<2x64xf32>
    %149 = math.tanh %148 : vector<2x64xf32>
    %150 = arith.mulf %145, %149 : vector<2x64xf32>
    %151 = vector.extract_strided_slice %150 {offsets = [0, 0], sizes = [2, 32], strides = [1, 1]} : vector<2x64xf32> to vector<2x32xf32>
    %c2_i32_51 = arith.constant 2 : i32
    %152 = arith.muli %c4_i32, %c2_i32_51 : i32
    %153 = arith.index_cast %152 : i32 to index
    %c0_52 = arith.constant 0 : index
    %154 = vector.load %arg11[%153, %c0_52] : memref<16x64xf32, #tpu.memory_space<vmem>>, vector<2x32xf32>
    tpu.vector_store %arg11[%153, %c0_52], %151 {strides = array<i32>} : memref<16x64xf32, #tpu.memory_space<vmem>>, vector<2x32xf32>,
    %155 = vector.extract_strided_slice %150 {offsets = [0, 32], sizes = [2, 32], strides = [1, 1]} : vector<2x64xf32> to vector<2x32xf32>
    %c7_i32_53 = arith.constant 7 : i32
    %156 = arith.subi %c7_i32_53, %c4_i32 : i32
    %c2_i32_54 = arith.constant 2 : i32
    %157 = arith.muli %156, %c2_i32_54 : i32
    %158 = arith.index_cast %157 : i32 to index
    %c32_55 = arith.constant 32 : index
    %159 = vector.load %arg11[%158, %c32_55] : memref<16x64xf32, #tpu.memory_space<vmem>>, vector<2x32xf32>
    tpu.vector_store %arg11[%158, %c32_55], %155 {strides = array<i32>} : memref<16x64xf32, #tpu.memory_space<vmem>>, vector<2x32xf32>,
    %c5_i32 = arith.constant 5 : i32
    %c2_i32_56 = arith.constant 2 : i32
    %160 = arith.muli %c5_i32, %c2_i32_56 : i32
    %161 = arith.index_cast %160 : i32 to index
    %c0_57 = arith.constant 0 : index
    %162 = vector.load %arg10[%161, %c0_57] : memref<16x256xf32, #tpu.memory_space<vmem>>, vector<2x256xf32>
    %cst_58 = arith.constant dense<0.000000e+00> : vector<2x256xf32>
    %163 = tpu.matmul %150, %7, %cst_58 {dimension_numbers = #tpu.dot_dimension_numbers<[1], [0], [0], [1], [0, 0, 1, 1], [], []>} : vector<2x64xf32>, vector<64x256xf32>, vector<2x256xf32> -> vector<2x256xf32>
    %164 = arith.addf %163, %162 : vector<2x256xf32>
    %165 = vector.extract_strided_slice %164 {offsets = [0, 0], sizes = [2, 192], strides = [1, 1]} : vector<2x256xf32> to vector<2x192xf32>
    %166 = arith.negf %165 : vector<2x192xf32>
    %167 = math.exp %166 : vector<2x192xf32>
    %cst_59 = arith.constant 1.000000e+00 : f32
    %168 = vector.broadcast %cst_59 : f32 to vector<2x192xf32>
    %169 = arith.addf %168, %167 : vector<2x192xf32>
    %170 = arith.divf %168, %169 : vector<2x192xf32>
    %171 = vector.extract_strided_slice %164 {offsets = [0, 192], sizes = [2, 64], strides = [1, 1]} : vector<2x256xf32> to vector<2x64xf32>
    %172 = math.tanh %171 : vector<2x64xf32>
    %173 = vector.extract_strided_slice %170 {offsets = [0, 0], sizes = [2, 64], strides = [1, 1]} : vector<2x192xf32> to vector<2x64xf32>
    %174 = vector.extract_strided_slice %170 {offsets = [0, 64], sizes = [2, 64], strides = [1, 1]} : vector<2x192xf32> to vector<2x64xf32>
    %175 = vector.extract_strided_slice %170 {offsets = [0, 128], sizes = [2, 64], strides = [1, 1]} : vector<2x192xf32> to vector<2x64xf32>
    %176 = arith.mulf %174, %148 : vector<2x64xf32>
    %177 = arith.mulf %173, %172 : vector<2x64xf32>
    %178 = arith.addf %176, %177 : vector<2x64xf32>
    %179 = math.tanh %178 : vector<2x64xf32>
    %180 = arith.mulf %175, %179 : vector<2x64xf32>
    %181 = vector.extract_strided_slice %180 {offsets = [0, 0], sizes = [2, 32], strides = [1, 1]} : vector<2x64xf32> to vector<2x32xf32>
    %c2_i32_60 = arith.constant 2 : i32
    %182 = arith.muli %c5_i32, %c2_i32_60 : i32
    %183 = arith.index_cast %182 : i32 to index
    %c0_61 = arith.constant 0 : index
    %184 = vector.load %arg11[%183, %c0_61] : memref<16x64xf32, #tpu.memory_space<vmem>>, vector<2x32xf32>
    tpu.vector_store %arg11[%183, %c0_61], %181 {strides = array<i32>} : memref<16x64xf32, #tpu.memory_space<vmem>>, vector<2x32xf32>,
    %185 = vector.extract_strided_slice %180 {offsets = [0, 32], sizes = [2, 32], strides = [1, 1]} : vector<2x64xf32> to vector<2x32xf32>
    %c7_i32_62 = arith.constant 7 : i32
    %186 = arith.subi %c7_i32_62, %c5_i32 : i32
    %c2_i32_63 = arith.constant 2 : i32
    %187 = arith.muli %186, %c2_i32_63 : i32
    %188 = arith.index_cast %187 : i32 to index
    %c32_64 = arith.constant 32 : index
    %189 = vector.load %arg11[%188, %c32_64] : memref<16x64xf32, #tpu.memory_space<vmem>>, vector<2x32xf32>
    tpu.vector_store %arg11[%188, %c32_64], %185 {strides = array<i32>} : memref<16x64xf32, #tpu.memory_space<vmem>>, vector<2x32xf32>,
    %c6_i32 = arith.constant 6 : i32
    %c2_i32_65 = arith.constant 2 : i32
    %190 = arith.muli %c6_i32, %c2_i32_65 : i32
    %191 = arith.index_cast %190 : i32 to index
    %c0_66 = arith.constant 0 : index
    %192 = vector.load %arg10[%191, %c0_66] : memref<16x256xf32, #tpu.memory_space<vmem>>, vector<2x256xf32>
    %cst_67 = arith.constant dense<0.000000e+00> : vector<2x256xf32>
    %193 = tpu.matmul %180, %7, %cst_67 {dimension_numbers = #tpu.dot_dimension_numbers<[1], [0], [0], [1], [0, 0, 1, 1], [], []>} : vector<2x64xf32>, vector<64x256xf32>, vector<2x256xf32> -> vector<2x256xf32>
    %194 = arith.addf %193, %192 : vector<2x256xf32>
    %195 = vector.extract_strided_slice %194 {offsets = [0, 0], sizes = [2, 192], strides = [1, 1]} : vector<2x256xf32> to vector<2x192xf32>
    %196 = arith.negf %195 : vector<2x192xf32>
    %197 = math.exp %196 : vector<2x192xf32>
    %cst_68 = arith.constant 1.000000e+00 : f32
    %198 = vector.broadcast %cst_68 : f32 to vector<2x192xf32>
    %199 = arith.addf %198, %197 : vector<2x192xf32>
    %200 = arith.divf %198, %199 : vector<2x192xf32>
    %201 = vector.extract_strided_slice %194 {offsets = [0, 192], sizes = [2, 64], strides = [1, 1]} : vector<2x256xf32> to vector<2x64xf32>
    %202 = math.tanh %201 : vector<2x64xf32>
    %203 = vector.extract_strided_slice %200 {offsets = [0, 0], sizes = [2, 64], strides = [1, 1]} : vector<2x192xf32> to vector<2x64xf32>
    %204 = vector.extract_strided_slice %200 {offsets = [0, 64], sizes = [2, 64], strides = [1, 1]} : vector<2x192xf32> to vector<2x64xf32>
    %205 = vector.extract_strided_slice %200 {offsets = [0, 128], sizes = [2, 64], strides = [1, 1]} : vector<2x192xf32> to vector<2x64xf32>
    %206 = arith.mulf %204, %178 : vector<2x64xf32>
    %207 = arith.mulf %203, %202 : vector<2x64xf32>
    %208 = arith.addf %206, %207 : vector<2x64xf32>
    %209 = math.tanh %208 : vector<2x64xf32>
    %210 = arith.mulf %205, %209 : vector<2x64xf32>
    %211 = vector.extract_strided_slice %210 {offsets = [0, 0], sizes = [2, 32], strides = [1, 1]} : vector<2x64xf32> to vector<2x32xf32>
    %c2_i32_69 = arith.constant 2 : i32
    %212 = arith.muli %c6_i32, %c2_i32_69 : i32
    %213 = arith.index_cast %212 : i32 to index
    %c0_70 = arith.constant 0 : index
    %214 = vector.load %arg11[%213, %c0_70] : memref<16x64xf32, #tpu.memory_space<vmem>>, vector<2x32xf32>
    tpu.vector_store %arg11[%213, %c0_70], %211 {strides = array<i32>} : memref<16x64xf32, #tpu.memory_space<vmem>>, vector<2x32xf32>,
    %215 = vector.extract_strided_slice %210 {offsets = [0, 32], sizes = [2, 32], strides = [1, 1]} : vector<2x64xf32> to vector<2x32xf32>
    %c7_i32_71 = arith.constant 7 : i32
    %216 = arith.subi %c7_i32_71, %c6_i32 : i32
    %c2_i32_72 = arith.constant 2 : i32
    %217 = arith.muli %216, %c2_i32_72 : i32
    %218 = arith.index_cast %217 : i32 to index
    %c32_73 = arith.constant 32 : index
    %219 = vector.load %arg11[%218, %c32_73] : memref<16x64xf32, #tpu.memory_space<vmem>>, vector<2x32xf32>
    tpu.vector_store %arg11[%218, %c32_73], %215 {strides = array<i32>} : memref<16x64xf32, #tpu.memory_space<vmem>>, vector<2x32xf32>,
    %c7_i32_74 = arith.constant 7 : i32
    %c2_i32_75 = arith.constant 2 : i32
    %220 = arith.muli %c7_i32_74, %c2_i32_75 : i32
    %221 = arith.index_cast %220 : i32 to index
    %c0_76 = arith.constant 0 : index
    %222 = vector.load %arg10[%221, %c0_76] : memref<16x256xf32, #tpu.memory_space<vmem>>, vector<2x256xf32>
    %cst_77 = arith.constant dense<0.000000e+00> : vector<2x256xf32>
    %223 = tpu.matmul %210, %7, %cst_77 {dimension_numbers = #tpu.dot_dimension_numbers<[1], [0], [0], [1], [0, 0, 1, 1], [], []>} : vector<2x64xf32>, vector<64x256xf32>, vector<2x256xf32> -> vector<2x256xf32>
    %224 = arith.addf %223, %222 : vector<2x256xf32>
    %225 = vector.extract_strided_slice %224 {offsets = [0, 0], sizes = [2, 192], strides = [1, 1]} : vector<2x256xf32> to vector<2x192xf32>
    %226 = arith.negf %225 : vector<2x192xf32>
    %227 = math.exp %226 : vector<2x192xf32>
    %cst_78 = arith.constant 1.000000e+00 : f32
    %228 = vector.broadcast %cst_78 : f32 to vector<2x192xf32>
    %229 = arith.addf %228, %227 : vector<2x192xf32>
    %230 = arith.divf %228, %229 : vector<2x192xf32>
    %231 = vector.extract_strided_slice %224 {offsets = [0, 192], sizes = [2, 64], strides = [1, 1]} : vector<2x256xf32> to vector<2x64xf32>
    %232 = math.tanh %231 : vector<2x64xf32>
    %233 = vector.extract_strided_slice %230 {offsets = [0, 0], sizes = [2, 64], strides = [1, 1]} : vector<2x192xf32> to vector<2x64xf32>
    %234 = vector.extract_strided_slice %230 {offsets = [0, 64], sizes = [2, 64], strides = [1, 1]} : vector<2x192xf32> to vector<2x64xf32>
    %235 = vector.extract_strided_slice %230 {offsets = [0, 128], sizes = [2, 64], strides = [1, 1]} : vector<2x192xf32> to vector<2x64xf32>
    %236 = arith.mulf %234, %208 : vector<2x64xf32>
    %237 = arith.mulf %233, %232 : vector<2x64xf32>
    %238 = arith.addf %236, %237 : vector<2x64xf32>
    %239 = math.tanh %238 : vector<2x64xf32>
    %240 = arith.mulf %235, %239 : vector<2x64xf32>
    %241 = vector.extract_strided_slice %240 {offsets = [0, 0], sizes = [2, 32], strides = [1, 1]} : vector<2x64xf32> to vector<2x32xf32>
    %c2_i32_79 = arith.constant 2 : i32
    %242 = arith.muli %c7_i32_74, %c2_i32_79 : i32
    %243 = arith.index_cast %242 : i32 to index
    %c0_80 = arith.constant 0 : index
    %244 = vector.load %arg11[%243, %c0_80] : memref<16x64xf32, #tpu.memory_space<vmem>>, vector<2x32xf32>
    tpu.vector_store %arg11[%243, %c0_80], %241 {strides = array<i32>} : memref<16x64xf32, #tpu.memory_space<vmem>>, vector<2x32xf32>,
    %245 = vector.extract_strided_slice %240 {offsets = [0, 32], sizes = [2, 32], strides = [1, 1]} : vector<2x64xf32> to vector<2x32xf32>
    %c7_i32_81 = arith.constant 7 : i32
    %246 = arith.subi %c7_i32_81, %c7_i32_74 : i32
    %c2_i32_82 = arith.constant 2 : i32
    %247 = arith.muli %246, %c2_i32_82 : i32
    %248 = arith.index_cast %247 : i32 to index
    %c32_83 = arith.constant 32 : index
    %249 = vector.load %arg11[%248, %c32_83] : memref<16x64xf32, #tpu.memory_space<vmem>>, vector<2x32xf32>
    tpu.vector_store %arg11[%248, %c32_83], %245 {strides = array<i32>} : memref<16x64xf32, #tpu.memory_space<vmem>>, vector<2x32xf32>,
    %c8_i32 = arith.constant 8 : i32
    %c0_84 = arith.constant 0 : index
    %c0_85 = arith.constant 0 : index
    %250 = vector.load %arg11[%c0_84, %c0_85] : memref<16x64xf32, #tpu.memory_space<vmem>>, vector<16x64xf32>
    %c0_86 = arith.constant 0 : index
    %c0_87 = arith.constant 0 : index
    %251 = vector.load %arg6[%c0_86, %c0_87] : memref<64x4xf32, #tpu.memory_space<vmem>>, vector<64x4xf32>
    %cst_88 = arith.constant dense<0.000000e+00> : vector<16x4xf32>
    %252 = tpu.matmul %250, %251, %cst_88 {dimension_numbers = #tpu.dot_dimension_numbers<[1], [0], [0], [1], [0, 0, 1, 1], [], []>} : vector<16x64xf32>, vector<64x4xf32>, vector<16x4xf32> -> vector<16x4xf32>
    %c0_89 = arith.constant 0 : index
    %c0_90 = arith.constant 0 : index
    %253 = vector.load %arg7[%c0_89, %c0_90] : memref<1x4xf32, #tpu.memory_space<vmem>>, vector<1x4xf32>
    %254 = vector.broadcast %253 : vector<1x4xf32> to vector<16x4xf32>
    %255 = arith.addf %252, %254 : vector<16x4xf32>
    %cst_91 = arith.constant dense<0xFF800000> : vector<16xf32>
    %256 = vector.multi_reduction <maximumf>, %255, %cst_91 [1] : vector<16x4xf32> to vector<16xf32>
    %257 = vector.shape_cast %256 : vector<16xf32> to vector<16x1xf32>
    %258 = vector.broadcast %257 : vector<16x1xf32> to vector<16x4xf32>
    %259 = arith.subf %255, %258 : vector<16x4xf32>
    %260 = math.exp %259 : vector<16x4xf32>
    %cst_92 = arith.constant dense<0.000000e+00> : vector<16xf32>
    %261 = vector.multi_reduction <add>, %260, %cst_92 [1] : vector<16x4xf32> to vector<16xf32>
    %262 = vector.shape_cast %261 : vector<16xf32> to vector<16x1xf32>
    %263 = math.log %262 : vector<16x1xf32>
    %264 = vector.broadcast %263 : vector<16x1xf32> to vector<16x4xf32>
    %265 = arith.subf %259, %264 : vector<16x4xf32>
    %c0_93 = arith.constant 0 : index
    %c0_94 = arith.constant 0 : index
    %266 = vector.load %arg8[%c0_93, %c0_94] : memref<16x4xf32, #tpu.memory_space<vmem>>, vector<16x4xf32>
    tpu.vector_store %arg8[%c0_93, %c0_94], %265 {strides = array<i32>} : memref<16x4xf32, #tpu.memory_space<vmem>>, vector<16x4xf32>,
    %267 = tpu.iota {dimensions = array<i32: 1>} : vector<16x4xi32>
    %268 = vector.broadcast %257 : vector<16x1xf32> to vector<16x4xf32>
    %269 = arith.cmpf oge, %255, %268 : vector<16x4xf32>
    %c4_i32_95 = arith.constant 4 : i32
    %270 = vector.broadcast %c4_i32_95 : i32 to vector<16x4xi32>
    %271 = arith.select %269, %267, %270 : vector<16x4xi1>, vector<16x4xi32>
    %cst_96 = arith.constant dense<2147483647> : vector<16xi32>
    %272 = vector.multi_reduction <minsi>, %271, %cst_96 [1] : vector<16x4xi32> to vector<16xi32>
    %273 = vector.shape_cast %272 : vector<16xi32> to vector<16x1xi32>
    %c0_97 = arith.constant 0 : index
    %c0_98 = arith.constant 0 : index
    %274 = vector.load %arg9[%c0_97, %c0_98] : memref<16x1xi32, #tpu.memory_space<vmem>>, vector<16x1xi32>
    tpu.vector_store %arg9[%c0_97, %c0_98], %273 {strides = array<i32>} : memref<16x1xi32, #tpu.memory_space<vmem>>, vector<16x1xi32>,
    return
  }
}

</mosaic_0001>

<bundles_post_ra>
// kernel: lstm_model_forward.1
= control target key start
LH: loop header
LB: loop body
LE: loop exit
PB: predicated region body
PF: predicated region fallthrough
CT: control target
= control target key end

     0   :  { %vm55_vm0 = vcmask 523264   ;;  %s1257_s13 = smov 64   ;;  %vm235_vm9 = vcmask 254976   ;;  %vm237_vm10 = vcmask 517376   ;;  %s1709_s1 = inlined_call_operand.vmem [shape: f32[64,256], index: 1, kind: input, shape index: {}]   ;;  %s1710_s2 = inlined_call_operand.vmem [shape: f32[64,256], index: 2, kind: input, shape index: {}]   ;;  %s1711_s0 = inlined_call_operand.vmem [shape: f32[16,64], index: 0, kind: input, shape index: {}]   ;;  %s1712_s4 = inlined_call_operand.vmem [shape: f32[2,64], index: 4, kind: input, shape index: {}]   ;;  %s1713_s3 = inlined_call_operand.vmem [shape: f32[1,256], index: 3, kind: input, shape index: {}]   ;;  %s1714_s5 = inlined_call_operand.vmem [shape: f32[2,64], index: 5, kind: input, shape index: {}]   ;;  %s1715_s6 = inlined_call_operand.vmem [shape: f32[64,4], index: 6, kind: input, shape index: {}]   ;;  %s1716_s7 = inlined_call_operand.vmem [shape: f32[1,4], index: 7, kind: input, shape index: {}]   ;;  %s1717_s8 = inlined_call_operand.vmem [shape: f32[16,4], index: 8, kind: output, shape index: {0}]   ;;  %s1718_s9 = inlined_call_operand.vmem [shape: s32[16,1], index: 9, kind: output, shape index: {1}]  }
   0x1   :  { %v47_v0 = vld [vmem:[%s1709_s1 + $0x70] sm:$0xff]  ;;  %v45_v2 = vld [vmem:[%s1709_s1 + $0x60] sm:$0xff]  ;;  %v48_v8 = vld [vmem:[%s1709_s1 + $0x78] sm:$0xff] }
   0x2   :  { %v1314_v1 = vld [vmem:[%s1710_s2 + $0x70] sm:$0xff]  ;;  %70 = vmatpush.msra.mxu0 %v47_v0  ;;  %v1323_v3 = vld [vmem:[%s1710_s2 + $0x60] sm:$0xff]  ;;  %v46_v9 = vld [vmem:[%s1709_s1 + $0x68] sm:$0xff]  ;;  %93 = vmatpush.msra.mxu1 %v48_v8 }
   0x3   :  { %143 = vmatpush.msra.mxu3 %v1314_v1  ;;  %v43_v4 = vld [vmem:[%s1709_s1 + $0x50] sm:$0xff]  ;;  %367 = vmatpush.msra.mxu2 %v1314_v1  ;;  %v41_v6 = vld [vmem:[%s1709_s1 + $0x40] sm:$0xff]  ;;  %v44_v12 = vld [vmem:[%s1709_s1 + $0x58] sm:$0xff] }
   0x4   :  { %v1331_v5 = vld [vmem:[%s1710_s2 + $0x50] sm:$0xff]  ;;  %71 = vmatpush.msra.mxu0 %v45_v2  ;;  %v1341_v7 = vld [vmem:[%s1710_s2 + $0x40] sm:$0xff]  ;;  %94 = vmatpush.msra.mxu1 %v46_v9  ;;  %v42_v15 = vld [vmem:[%s1709_s1 + $0x48] sm:$0xff] }
   0x5   :  { %144 = vmatpush.msra.mxu3 %v1323_v3  ;;  %368 = vmatpush.msra.mxu2 %v1323_v3  ;;  %v39_v10 = vld [vmem:[%s1709_s1 + $0x30] sm:$0xff]  ;;  %v37_v13 = vld [vmem:[%s1709_s1 + $0x20] sm:$0xff]  ;;  %v40_v18 = vld [vmem:[%s1709_s1 + $0x38] sm:$0xff] }
   0x6   :  { %72 = vmatpush.msra.mxu0 %v43_v4  ;;  %v1357_v11 = vld [vmem:[%s1710_s2 + $0x30] sm:$0xff]  ;;  %v1370_v14 = vld [vmem:[%s1710_s2 + $0x20] sm:$0xff]  ;;  %95 = vmatpush.msra.mxu1 %v44_v12  ;;  %v1406_v22 = vld [vmem:[%s1710_s2 + $0x78] sm:$0xff] }
   0x7   :  { %145 = vmatpush.msra.mxu3 %v1331_v5  ;;  %369 = vmatpush.msra.mxu2 %v1331_v5  ;;  %v35_v16 = vld [vmem:[%s1709_s1 + $0x10] sm:$0xff]  ;;  %v33_v19 = vld [vmem:[%s1709_s1] sm:$0xff]  ;;  %v38_v24 = vld [vmem:[%s1709_s1 + $0x28] sm:$0xff] }
   0x8   :  { %73 = vmatpush.msra.mxu0 %v41_v6  ;;  %v1383_v17 = vld [vmem:[%s1710_s2 + $0x10] sm:$0xff]  ;;  %v1396_v20 = vld [vmem:[%s1710_s2] sm:$0xff]  ;;  %96 = vmatpush.msra.mxu1 %v42_v15  ;;  %v1419_v25 = vld [vmem:[%s1710_s2 + $0x68] sm:$0xff] }
   0x9   :  { %146 = vmatpush.msra.mxu3 %v1341_v7  ;;  %370 = vmatpush.msra.mxu2 %v1341_v7  ;;  %v31_v21 = vld [vmem:[%s1711_s0] sm:$0xff]  ;;  %v36_v26 = vld [vmem:[%s1709_s1 + $0x18] sm:$0xff]  ;;  %v34_v28 = vld [vmem:[%s1709_s1 + $0x8] sm:$0xff] }
   0xa   :  { %74 = vmatpush.msra.mxu0 %v39_v10  ;;  %97 = vmatpush.msra.mxu1 %v40_v18  ;;  %v128_v23 = vld [vmem:[%s1712_s4] sm:$0x3]  ;;  %v1430_v27 = vld [vmem:[%s1710_s2 + $0x58] sm:$0xff]  ;;  %v1440_v29 = vld [vmem:[%s1710_s2 + $0x48] sm:$0xff] }
   0xb   :  { %147 = vmatpush.msra.mxu3 %v1357_v11  ;;  %371 = vmatpush.msra.mxu2 %v1357_v11  ;;  %v1448_v30 = vld [vmem:[%s1710_s2 + $0x38] sm:$0xff]  ;;  %v1456_v31 = vld [vmem:[%s1710_s2 + $0x28] sm:$0xff]  ;;  %v1529_v34 = vld [vmem:[%s1713_s3] sm:$0x3] }
   0xc   :  { %75 = vmatpush.msra.mxu0 %v37_v13  ;;  %98 = vmatpush.msra.mxu1 %v38_v24  ;;  %v1465_v32 = vld [vmem:[%s1710_s2 + $0x18] sm:$0xff]  ;;  %v1474_v33 = vld [vmem:[%s1710_s2 + $0x8] sm:$0xff]  ;;  %v51_v35 = vperm.slane %v1529_v34, 0  ;;  %v52_v38 = vperm.slane %v1529_v34, 1  ;;  %v129_v46 = vld [vmem:[%s1714_s5] sm:$0x3] }
   0xd   :  { %148 = vmatpush.msra.mxu3 %v1370_v14  ;;  %372 = vmatpush.msra.mxu2 %v1370_v14  ;;  %v32_v0 = vld [vmem:[%s1711_s0 + $0x8] sm:$0xff] }
   0xe   :  { %76 = vmatpush.msra.mxu0 %v35_v16  ;;  %99 = vmatpush.msra.mxu1 %v36_v26 }
   0xf   :  { %149 = vmatpush.msra.mxu3 %v1383_v17  ;;  %373 = vmatpush.msra.mxu2 %v1383_v17 }
  0x10   :  { %77 = vmatpush.msra.mxu0 %v33_v19  ;;  %100 = vmatpush.msra.mxu1 %v34_v28 }
  0x11   :  { %150 = vmatpush.msra.mxu3 %v1396_v20  ;;  %1113 = vmatmul.msk.f32.vlgmr.msra.gmra.mxu0 %vm55_vm0, %v31_v21 }
  0x12   :  { %1117 = vmatmul.msk.f32.vlgmr.msra.gmra.mxu3 %vm55_vm0, %v128_v23  ;;  %258 = vmatpush.msrb.mxu0 %v1314_v1 }
  0x13   :  { %163 = vmatpush.msrb.mxu3 %v1406_v22  ;;  %374 = vmatpush.msra.mxu2 %v1396_v20 }
  0x14   :  { %259 = vmatpush.msrb.mxu0 %v1323_v3  ;;  %1115 = vmatmul.msk.f32.vlgmr.msra.gmra.mxu1 %vm55_vm0, %v31_v21 }
  0x15   :  { %164 = vmatpush.msrb.mxu3 %v1419_v25  ;;  %579 = vmatpush.msrb.mxu2 %v1314_v1 }
  0x16   :  { %278 = vmatpush.msrb.mxu1 %v1406_v22  ;;  %260 = vmatpush.msrb.mxu0 %v1331_v5 }
  0x17   :  { %165 = vmatpush.msrb.mxu3 %v1430_v27  ;;  %580 = vmatpush.msrb.mxu2 %v1323_v3 }
  0x18   :  { %279 = vmatpush.msrb.mxu1 %v1419_v25  ;;  %261 = vmatpush.msrb.mxu0 %v1341_v7 }
  0x19   :  { %166 = vmatpush.msrb.mxu3 %v1440_v29  ;;  %581 = vmatpush.msrb.mxu2 %v1331_v5 }
  0x1a   :  { %280 = vmatpush.msrb.mxu1 %v1430_v27  ;;  %262 = vmatpush.msrb.mxu0 %v1357_v11 }
  0x1b   :  { %167 = vmatpush.msrb.mxu3 %v1448_v30  ;;  %582 = vmatpush.msrb.mxu2 %v1341_v7 }
  0x1c   :  { %281 = vmatpush.msrb.mxu1 %v1440_v29  ;;  %263 = vmatpush.msrb.mxu0 %v1370_v14 }
  0x1d   :  { %168 = vmatpush.msrb.mxu3 %v1456_v31  ;;  %583 = vmatpush.msrb.mxu2 %v1357_v11 }
  0x1e   :  { %282 = vmatpush.msrb.mxu1 %v1448_v30  ;;  %264 = vmatpush.msrb.mxu0 %v1383_v17 }
  0x1f   :  { %169 = vmatpush.msrb.mxu3 %v1465_v32  ;;  %584 = vmatpush.msrb.mxu2 %v1370_v14 }
  0x20   :  { %283 = vmatpush.msrb.mxu1 %v1456_v31  ;;  %265 = vmatpush.msrb.mxu0 %v1396_v20 }
  0x21   :  { %170 = vmatpush.msrb.mxu3 %v1474_v33  ;;  %585 = vmatpush.msrb.mxu2 %v1383_v17 }
  0x22   :  { %1118 = vmatmul.msk.f32.vlgmr.msrb.gmra.mxu3 %vm55_vm0, %v128_v23  ;;  %284 = vmatpush.msrb.mxu1 %v1465_v32 }
  0x23   :  { %387 = vmatpush.msra.mxu3 %v1406_v22  ;;  %476 = vmatpush.msra.mxu0 %v1314_v1 }
  0x24   :  { %285 = vmatpush.msrb.mxu1 %v1474_v33  ;;  %586 = vmatpush.msrb.mxu2 %v1396_v20 }
  0x25   :  { %388 = vmatpush.msra.mxu3 %v1419_v25  ;;  %477 = vmatpush.msra.mxu0 %v1323_v3 }
  0x26   :  { %496 = vmatpush.msra.mxu1 %v1406_v22  ;;  %1114 = vmatmul.msk.f32.gmra.mxu0 %vm55_vm0, %v32_v0 }
  0x27   :  { %389 = vmatpush.msra.mxu3 %v1430_v27  ;;  %478 = vmatpush.msra.mxu0 %v1331_v5 }
  0x28   :  { %497 = vmatpush.msra.mxu1 %v1419_v25 }
  0x29   :  { %390 = vmatpush.msra.mxu3 %v1440_v29  ;;  %479 = vmatpush.msra.mxu0 %v1341_v7 }
  0x2a   :  { %498 = vmatpush.msra.mxu1 %v1430_v27 }
  0x2b   :  { %391 = vmatpush.msra.mxu3 %v1448_v30  ;;  %480 = vmatpush.msra.mxu0 %v1357_v11 }
  0x2c   :  { %499 = vmatpush.msra.mxu1 %v1440_v29 }
  0x2d   :  { %392 = vmatpush.msra.mxu3 %v1456_v31  ;;  %481 = vmatpush.msra.mxu0 %v1370_v14 }
  0x2e   :  { %500 = vmatpush.msra.mxu1 %v1448_v30 }
  0x2f   :  { %393 = vmatpush.msra.mxu3 %v1465_v32  ;;  %482 = vmatpush.msra.mxu0 %v1383_v17 }
  0x30   :  { %501 = vmatpush.msra.mxu1 %v1456_v31 }
  0x31   :  { %394 = vmatpush.msra.mxu3 %v1474_v33  ;;  %483 = vmatpush.msra.mxu0 %v1396_v20 }
  0x32   :  { %502 = vmatpush.msra.mxu1 %v1465_v32 }
  0x33   :  { %599 = vmatpush.msrb.mxu3 %v1406_v22  ;;  %1116 = vmatmul.msk.f32.gmra.mxu1 %vm55_vm0, %v32_v0 }
  0x34   :  { %503 = vmatpush.msra.mxu1 %v1474_v33 }
  0x35   :  { %600 = vmatpush.msrb.mxu3 %v1419_v25 }
  0x37   :  { %601 = vmatpush.msrb.mxu3 %v1430_v27 }
  0x39   :  { %602 = vmatpush.msrb.mxu3 %v1440_v29 }
  0x3b   :  { %603 = vmatpush.msrb.mxu3 %v1448_v30 }
  0x3d   :  { %604 = vmatpush.msrb.mxu3 %v1456_v31 }
  0x3f   :  { %605 = vmatpush.msrb.mxu3 %v1465_v32 }
  0x41   :  { %606 = vmatpush.msrb.mxu3 %v1474_v33 }
  0x8e   :  { %v79_v36 = vpop.f32.mrf.mxu0 }
  0x8f   :  { %v80_v37 = vadd.f32 %v79_v36, %v51_v35 }
  0x91   :  { %108 = vst [vmem:[#allocation2 + $0x10] sm:$0xff] %v80_v37  ;;  %v102_v39 = vpop.f32.mrf.mxu1 }
  0x92   :  { %v103_v40 = vadd.f32 %v102_v39, %v52_v38 }
  0x94   :  { %109 = vst [vmem:[#allocation2] sm:$0xff] %v103_v40 }
  0x95   :  { %v152_v41 = vpop.f32.mrf.mxu3 }
  0x98   :  { %v130_v47 = vld [vmem:[#allocation2 + $0x10] sm:$0x3] }
  0x99   :  { %v153_v48 = vadd.f32 %v152_v41, %v130_v47 }
  0x9b   :  { %v131_v42 = vld [vmem:[#allocation2] sm:$0x3]  ;;  %v1119_v49 = vmul.f32 -1.442695, %v153_v48 }
  0xa3   :  { %v82_v16 = vpop.f32.mrf.mxu0 }
  0xa4   :  { %v83_v21 = vadd.f32 %v82_v16, %v51_v35  ;;  %v240_v35 = vld [vmem:[#allocation2] sm:$0xc] }
  0xa5   :  { %v172_v43 = vpop.f32.mrf.mxu3 }
  0xa6   :  { %v173_v44 = vadd.f32 %v172_v43, %v131_v42  ;;  %110 = vst [vmem:[#allocation2 + $0x18] sm:$0xff] %v83_v21 }
  0xa8   :  { %1153 = vtanh.f32 %v173_v44  ;;  %v1120_v10 = vmul.f32 -1.442695, %v173_v44 }
  0xa9   :  { %1155 = vpow2.f32 %v1119_v49 }
  0xae   :  { %v1154_v45 = vpop.eup %1153 }
  0xaf   :  { %220 = vrot.lane.b32.xlu0 %v1154_v45, %s1257_s13  ;;  %v1156_v50 = vpop.eup %1155 }
  0xb0   :  { %v181_v51 = vadd.f32 1.0, %v1156_v50  ;;  %v105_v18 = vpop.f32.mrf.mxu1 }
  0xb1   :  { %v106_v23 = vadd.f32 %v105_v18, %v52_v38  ;;  %v244_v38 = vrot.slane %v240_v35, 2  ;;  %v348_v35 = vld [vmem:[#allocation2 + $0x10] sm:$0x30] }
  0xb2   :  { %1157 = vrcp.f32 %v181_v51  ;;  %v194_v57 = vand.u32 2147483648, %v181_v51  ;;  %vm188_vm2 = vweird.f32 %v181_v51  ;;  %v192_v58 = vand.u32 2147483647, %v181_v51 }
  0xb3   :  { %111 = vst [vmem:[#allocation2 + $0x8] sm:$0xff] %v106_v23 }
  0xb4   :  { %v195_v60 = vor.u32 1.1754944e-38, %v194_v57  ;;  %vm193_vm4 = vcmp.eq.f32.partialorder %v192_v58, 8.507059e+37 }
  0xb7   :  { %215 = vrot.lane.b32.xlu0 %v129_v46, %s1257_s13  ;;  %v239_v46 = vld [vmem:[#allocation2 + $0x10] sm:$0xc] }
  0xb8   :  { %v1158_v52 = vpop.eup %1157  ;;  %v243_v48 = vrot.slane %v239_v46, 2 }
  0xb9   :  { %v184_v53 = vmul.f32 %v1158_v52, %v181_v51  ;;  %vm189_vm1 = vweird.f32 %v1158_v52 }
  0xba   :  { %vm190_vm3 = vmor %vm188_vm2, %vm189_vm1 }
  0xbb   :  { %v185_v54 = vsub.f32 1.0, %v184_v53 }
  0xbd   :  { %v186_v55 = vmul.f32 %v1158_v52, %v185_v54 }
  0xbf   :  { %v187_v56 = vadd.f32 %v1158_v52, %v186_v55 }
  0xc1   :  { %v191_v59 = vsel %vm190_vm3, %v1158_v52, %v187_v56 }
  0xc2   :  { %v196_v62 = vsel %vm193_vm4, %v195_v60, %v191_v59 }
 0x121   :  { %v221_v61 = vpop.permute.xlu0 %220 }
 0x122   :  { %v223_v63 = vmul.f32 %v221_v61, %v196_v62 }
 0x124   :  { %225 = vrot.lane.b32.xlu1 %v223_v63, %s1257_s13 }
 0x129   :  { %v216_v2 = vpop.permute.xlu0 %215 }
 0x12a   :  { %v218_v4 = vmul.f32 %v216_v2, %v196_v62 }
 0x196   :  { %v226_v6 = vpop.permute.xlu1 %225 }
 0x197   :  { %v1544_v8 = vadd.f32 %v226_v6, %v218_v4 }
 0x199   :  { %1159 = vtanh.f32 %v1544_v8 }
 0x19a   :  { %1161 = vpow2.f32 %v1120_v10 }
 0x19f   :  { %v1160_v9 = vpop.eup %1159 }
 0x1a0   :  { %231 = vrot.lane.b32.xlu1 %v1160_v9, %s1257_s13  ;;  %v1162_v12 = vpop.eup %1161 }
 0x1a1   :  { %v182_v13 = vadd.f32 1.0, %v1162_v12 }
 0x1a3   :  { %1163 = vrcp.f32 %v182_v13  ;;  %v209_v34 = vand.u32 2147483648, %v182_v13  ;;  %vm203_vm6 = vweird.f32 %v182_v13  ;;  %v207_v36 = vand.u32 2147483647, %v182_v13 }
 0x1a5   :  { %v210_v39 = vor.u32 1.1754944e-38, %v209_v34  ;;  %vm208_vm8 = vcmp.eq.f32.partialorder %v207_v36, 8.507059e+37 }
 0x1a9   :  { %v1164_v15 = vpop.eup %1163 }
 0x1aa   :  { %v199_v19 = vmul.f32 %v1164_v15, %v182_v13  ;;  %vm204_vm5 = vweird.f32 %v1164_v15 }
 0x1ab   :  { %vm205_vm7 = vmor %vm203_vm6, %vm204_vm5 }
 0x1ac   :  { %v200_v24 = vsub.f32 1.0, %v199_v19 }
 0x1ae   :  { %v201_v26 = vmul.f32 %v1164_v15, %v200_v24 }
 0x1b0   :  { %v202_v28 = vadd.f32 %v1164_v15, %v201_v26 }
 0x1b2   :  { %v206_v37 = vsel %vm205_vm7, %v1164_v15, %v202_v28 }
 0x1b3   :  { %v211_v40 = vsel %vm208_vm8, %v210_v39, %v206_v37  ;;  %v349_v37 = vld [vmem:[#allocation2] sm:$0x30] }
 0x1b4   :  { %v353_v39 = vrot.slane %v349_v37, 4 }
 0x212   :  { %v232_v41 = vpop.permute.xlu1 %231 }
 0x213   :  { %v234_v42 = vmul.f32 %v232_v41, %v211_v40 }
 0x215   :  { %1121 = vmatmul.msk.f32.vlgmr.msrb.gmra.mxu0 %vm55_vm0, %v234_v42  ;;  %1122 = vmatmul.msk.f32.vlgmr.msrb.gmra.mxu1 %vm55_vm0, %v234_v42  ;;  %236 = vst.msk [vmem:[#allocation3] sm:$0x3] %vm235_vm9, %v234_v42 }
 0x216   :  { %238 = vst.msk [vmem:[#allocation3 + $0xe] sm:$0x3] %vm237_vm10, %v234_v42  ;;  %688 = vmatpush.msrb.mxu0 %v1314_v1  ;;  %708 = vmatpush.msrb.mxu1 %v1406_v22 }
 0x218   :  { %689 = vmatpush.msrb.mxu0 %v1323_v3  ;;  %709 = vmatpush.msrb.mxu1 %v1419_v25 }
 0x21a   :  { %690 = vmatpush.msrb.mxu0 %v1331_v5  ;;  %710 = vmatpush.msrb.mxu1 %v1430_v27 }
 0x21c   :  { %691 = vmatpush.msrb.mxu0 %v1341_v7  ;;  %711 = vmatpush.msrb.mxu1 %v1440_v29 }
 0x21e   :  { %692 = vmatpush.msrb.mxu0 %v1357_v11  ;;  %712 = vmatpush.msrb.mxu1 %v1448_v30 }
 0x220   :  { %693 = vmatpush.msrb.mxu0 %v1370_v14  ;;  %713 = vmatpush.msrb.mxu1 %v1456_v31 }
 0x222   :  { %694 = vmatpush.msrb.mxu0 %v1383_v17  ;;  %714 = vmatpush.msrb.mxu1 %v1465_v32 }
 0x224   :  { %695 = vmatpush.msrb.mxu0 %v1396_v20  ;;  %715 = vmatpush.msrb.mxu1 %v1474_v33 }
 0x292   :  { %v287_v43 = vpop.f32.mrf.mxu1  ;;  %v267_v47 = vpop.f32.mrf.mxu0 }
 0x293   :  { %v288_v44 = vadd.f32 %v287_v43, %v244_v38  ;;  %v268_v49 = vadd.f32 %v267_v47, %v243_v48  ;;  %v352_v43 = vrot.slane %v348_v35, 4 }
 0x295   :  { %1165 = vtanh.f32 %v288_v44  ;;  %v1123_v50 = vmul.f32 -1.442695, %v268_v49  ;;  %v1124_v10 = vmul.f32 -1.442695, %v288_v44 }
 0x297   :  { %1167 = vpow2.f32 %v1123_v50 }
 0x29b   :  { %v1166_v45 = vpop.eup %1165 }
 0x29c   :  { %331 = vrot.lane.b32.xlu2 %v1166_v45, %s1257_s13 }
 0x29d   :  { %v1168_v51 = vpop.eup %1167 }
 0x29e   :  { %v296_v52 = vadd.f32 1.0, %v1168_v51 }
 0x2a0   :  { %1169 = vrcp.f32 %v296_v52  ;;  %v309_v58 = vand.u32 2147483648, %v296_v52  ;;  %vm303_vm12 = vweird.f32 %v296_v52  ;;  %v307_v59 = vand.u32 2147483647, %v296_v52 }
 0x2a2   :  { %v310_v61 = vor.u32 1.1754944e-38, %v309_v58  ;;  %vm308_vm14 = vcmp.eq.f32.partialorder %v307_v59, 8.507059e+37 }
 0x2a6   :  { %v1170_v53 = vpop.eup %1169 }
 0x2a7   :  { %v299_v54 = vmul.f32 %v1170_v53, %v296_v52  ;;  %vm304_vm11 = vweird.f32 %v1170_v53 }
 0x2a8   :  { %vm305_vm13 = vmor %vm303_vm12, %vm304_vm11 }
 0x2a9   :  { %v300_v55 = vsub.f32 1.0, %v299_v54 }
 0x2ab   :  { %v301_v56 = vmul.f32 %v1170_v53, %v300_v55 }
 0x2ad   :  { %v302_v57 = vadd.f32 %v1170_v53, %v301_v56 }
 0x2af   :  { %v306_v60 = vsel %vm305_vm13, %v1170_v53, %v302_v57 }
 0x2b0   :  { %v311_v63 = vsel %vm308_vm14, %v310_v61, %v306_v60 }
 0x2b1   :  { %v329_v2 = vmul.f32 %v311_v63, %v1544_v8 }
 0x2f6   :  { %v332_v62 = vpop.permute.xlu2 %331 }
 0x2f7   :  { %v334_v0 = vmul.f32 %v332_v62, %v311_v63 }
 0x2f9   :  { %336 = vrot.lane.b32.xlu2 %v334_v0, %s1257_s13 }
 0x353   :  { %v337_v4 = vpop.permute.xlu2 %336 }
 0x354   :  { %v1571_v6 = vadd.f32 %v337_v4, %v329_v2 }
 0x356   :  { %1171 = vtanh.f32 %v1571_v6 }
 0x357   :  { %1173 = vpow2.f32 %v1124_v10 }
 0x35c   :  { %v1172_v9 = vpop.eup %1171 }
 0x35d   :  { %342 = vrot.lane.b32.xlu0 %v1172_v9, %s1257_s13  ;;  %v1174_v12 = vpop.eup %1173 }
 0x35e   :  { %v297_v13 = vadd.f32 1.0, %v1174_v12 }
 0x360   :  { %1175 = vrcp.f32 %v297_v13  ;;  %v324_v8 = vand.u32 2147483648, %v297_v13  ;;  %vm318_vm1 = vweird.f32 %v297_v13  ;;  %v322_v23 = vand.u32 2147483647, %v297_v13 }
 0x362   :  { %v325_v26 = vor.u32 1.1754944e-38, %v324_v8  ;;  %vm323_vm3 = vcmp.eq.f32.partialorder %v322_v23, 8.507059e+37 }
 0x366   :  { %v1176_v15 = vpop.eup %1175 }
 0x367   :  { %v314_v16 = vmul.f32 %v1176_v15, %v297_v13  ;;  %vm319_vm15 = vweird.f32 %v1176_v15 }
 0x368   :  { %vm320_vm2 = vmor %vm318_vm1, %vm319_vm15 }
 0x369   :  { %v315_v18 = vsub.f32 1.0, %v314_v16 }
 0x36b   :  { %v316_v19 = vmul.f32 %v1176_v15, %v315_v18 }
 0x36d   :  { %v317_v21 = vadd.f32 %v1176_v15, %v316_v19 }
 0x36f   :  { %v321_v24 = vsel %vm320_vm2, %v1176_v15, %v317_v21 }
 0x370   :  { %v326_v28 = vsel %vm323_vm3, %v325_v26, %v321_v24 }
 0x3cf   :  { %v343_v34 = vpop.permute.xlu0 %342 }
 0x3d0   :  { %v345_v36 = vmul.f32 %v343_v34, %v326_v28 }
 0x3d2   :  { %346 = vst.msk [vmem:[#allocation3 + $0x2] sm:$0x3] %vm235_vm9, %v345_v36  ;;  %1125 = vmatmul.msk.f32.vlgmr.msra.gmra.mxu2 %vm55_vm0, %v345_v36  ;;  %1126 = vmatmul.msk.f32.vlgmr.msra.gmra.mxu3 %vm55_vm0, %v345_v36 }
 0x3d3   :  { %347 = vst.msk [vmem:[#allocation3 + $0xc] sm:$0x3] %vm237_vm10, %v345_v36  ;;  %797 = vmatpush.msra.mxu2 %v1314_v1  ;;  %817 = vmatpush.msra.mxu3 %v1406_v22 }
 0x3d5   :  { %798 = vmatpush.msra.mxu2 %v1323_v3  ;;  %818 = vmatpush.msra.mxu3 %v1419_v25 }
 0x3d7   :  { %799 = vmatpush.msra.mxu2 %v1331_v5  ;;  %819 = vmatpush.msra.mxu3 %v1430_v27 }
 0x3d9   :  { %800 = vmatpush.msra.mxu2 %v1341_v7  ;;  %820 = vmatpush.msra.mxu3 %v1440_v29 }
 0x3db   :  { %801 = vmatpush.msra.mxu2 %v1357_v11  ;;  %821 = vmatpush.msra.mxu3 %v1448_v30 }
 0x3dd   :  { %802 = vmatpush.msra.mxu2 %v1370_v14  ;;  %822 = vmatpush.msra.mxu3 %v1456_v31 }
 0x3df   :  { %803 = vmatpush.msra.mxu2 %v1383_v17  ;;  %823 = vmatpush.msra.mxu3 %v1465_v32 }
 0x3e1   :  { %804 = vmatpush.msra.mxu2 %v1396_v20  ;;  %824 = vmatpush.msra.mxu3 %v1474_v33 }
 0x455   :  { %v396_v40 = vpop.f32.mrf.mxu3  ;;  %v376_v38 = vpop.f32.mrf.mxu2 }
 0x456   :  { %v397_v41 = vadd.f32 %v396_v40, %v353_v39  ;;  %v377_v44 = vadd.f32 %v376_v38, %v352_v43 }
 0x458   :  { %1177 = vtanh.f32 %v397_v41  ;;  %v1127_v45 = vmul.f32 -1.442695, %v377_v44  ;;  %v1128_v0 = vmul.f32 -1.442695, %v397_v41 }
 0x45a   :  { %1179 = vpow2.f32 %v1127_v45 }
 0x45e   :  { %v1178_v42 = vpop.eup %1177 }
 0x45f   :  { %440 = vrot.lane.b32.xlu1 %v1178_v42, %s1257_s13 }
 0x460   :  { %v1180_v46 = vpop.eup %1179 }
 0x461   :  { %v405_v47 = vadd.f32 1.0, %v1180_v46 }
 0x463   :  { %1181 = vrcp.f32 %v405_v47  ;;  %v418_v53 = vand.u32 2147483648, %v405_v47  ;;  %vm412_vm5 = vweird.f32 %v405_v47  ;;  %v416_v54 = vand.u32 2147483647, %v405_v47 }
 0x465   :  { %v419_v56 = vor.u32 1.1754944e-38, %v418_v53  ;;  %vm417_vm7 = vcmp.eq.f32.partialorder %v416_v54, 8.507059e+37 }
 0x469   :  { %v1182_v48 = vpop.eup %1181 }
 0x46a   :  { %v408_v49 = vmul.f32 %v1182_v48, %v405_v47  ;;  %vm413_vm4 = vweird.f32 %v1182_v48 }
 0x46b   :  { %vm414_vm6 = vmor %vm412_vm5, %vm413_vm4 }
 0x46c   :  { %v409_v50 = vsub.f32 1.0, %v408_v49 }
 0x46e   :  { %v410_v51 = vmul.f32 %v1182_v48, %v409_v50 }
 0x470   :  { %v411_v52 = vadd.f32 %v1182_v48, %v410_v51 }
 0x472   :  { %v415_v55 = vsel %vm414_vm6, %v1182_v48, %v411_v52 }
 0x473   :  { %v420_v58 = vsel %vm417_vm7, %v419_v56, %v415_v55 }
 0x474   :  { %v438_v60 = vmul.f32 %v420_v58, %v1571_v6 }
 0x4d1   :  { %v441_v57 = vpop.permute.xlu1 %440 }
 0x4d2   :  { %v443_v59 = vmul.f32 %v441_v57, %v420_v58  ;;  %v567_v58 = vld [vmem:[#allocation2 + $0x8] sm:$0x3] }
 0x4d4   :  { %445 = vrot.lane.b32.xlu2 %v443_v59, %s1257_s13 }
 0x52e   :  { %v446_v61 = vpop.permute.xlu2 %445 }
 0x52f   :  { %v1598_v62 = vadd.f32 %v446_v61, %v438_v60 }
 0x531   :  { %1183 = vtanh.f32 %v1598_v62 }
 0x532   :  { %1185 = vpow2.f32 %v1128_v0 }
 0x537   :  { %v1184_v63 = vpop.eup %1183 }
 0x538   :  { %451 = vrot.lane.b32.xlu0 %v1184_v63, %s1257_s13  ;;  %v1186_v2 = vpop.eup %1185  ;;  %v566_v63 = vld [vmem:[#allocation2 + $0x18] sm:$0x3] }
 0x539   :  { %v406_v4 = vadd.f32 1.0, %v1186_v2 }
 0x53b   :  { %1187 = vrcp.f32 %v406_v4  ;;  %v433_v6 = vand.u32 2147483648, %v406_v4  ;;  %vm427_vm11 = vweird.f32 %v406_v4  ;;  %v431_v16 = vand.u32 2147483647, %v406_v4 }
 0x53d   :  { %v434_v19 = vor.u32 1.1754944e-38, %v433_v6  ;;  %vm432_vm13 = vcmp.eq.f32.partialorder %v431_v16, 8.507059e+37 }
 0x541   :  { %v1188_v9 = vpop.eup %1187 }
 0x542   :  { %v423_v10 = vmul.f32 %v1188_v9, %v406_v4  ;;  %vm428_vm8 = vweird.f32 %v1188_v9 }
 0x543   :  { %vm429_vm12 = vmor %vm427_vm11, %vm428_vm8 }
 0x544   :  { %v424_v12 = vsub.f32 1.0, %v423_v10 }
 0x546   :  { %v425_v13 = vmul.f32 %v1188_v9, %v424_v12 }
 0x548   :  { %v426_v15 = vadd.f32 %v1188_v9, %v425_v13 }
 0x54a   :  { %v430_v18 = vsel %vm429_vm12, %v1188_v9, %v426_v15 }
 0x54b   :  { %v435_v21 = vsel %vm432_vm13, %v434_v19, %v430_v18 }
 0x5aa   :  { %v452_v8 = vpop.permute.xlu0 %451 }
 0x5ab   :  { %v454_v23 = vmul.f32 %v452_v8, %v435_v21 }
 0x5ad   :  { %455 = vst.msk [vmem:[#allocation3 + $0x4] sm:$0x3] %vm235_vm9, %v454_v23  ;;  %1129 = vmatmul.msk.f32.vlgmr.msra.gmra.mxu0 %vm55_vm0, %v454_v23  ;;  %1130 = vmatmul.msk.f32.vlgmr.msra.gmra.mxu1 %vm55_vm0, %v454_v23 }
 0x5ae   :  { %456 = vst.msk [vmem:[#allocation3 + $0xa] sm:$0x3] %vm237_vm10, %v454_v23  ;;  %906 = vmatpush.msra.mxu0 %v1314_v1  ;;  %926 = vmatpush.msra.mxu1 %v1406_v22  ;;  %v458_v1 = vld [vmem:[#allocation2] sm:$0xc0]  ;;  %v457_v22 = vld [vmem:[#allocation2 + $0x10] sm:$0xc0] }
 0x5b0   :  { %907 = vmatpush.msra.mxu0 %v1323_v3  ;;  %927 = vmatpush.msra.mxu1 %v1419_v25  ;;  %v462_v3 = vrot.slane %v458_v1, 6  ;;  %v461_v25 = vrot.slane %v457_v22, 6 }
 0x5b2   :  { %908 = vmatpush.msra.mxu0 %v1331_v5  ;;  %928 = vmatpush.msra.mxu1 %v1430_v27 }
 0x5b4   :  { %909 = vmatpush.msra.mxu0 %v1341_v7  ;;  %929 = vmatpush.msra.mxu1 %v1440_v29 }
 0x5b6   :  { %910 = vmatpush.msra.mxu0 %v1357_v11  ;;  %930 = vmatpush.msra.mxu1 %v1448_v30 }
 0x5b8   :  { %911 = vmatpush.msra.mxu0 %v1370_v14  ;;  %931 = vmatpush.msra.mxu1 %v1456_v31 }
 0x5ba   :  { %912 = vmatpush.msra.mxu0 %v1383_v17  ;;  %932 = vmatpush.msra.mxu1 %v1465_v32 }
 0x5bc   :  { %913 = vmatpush.msra.mxu0 %v1396_v20  ;;  %933 = vmatpush.msra.mxu1 %v1474_v33 }
 0x62a   :  { %v505_v5 = vpop.f32.mrf.mxu1  ;;  %v485_v14 = vpop.f32.mrf.mxu0 }
 0x62b   :  { %v506_v7 = vadd.f32 %v505_v5, %v462_v3  ;;  %v486_v27 = vadd.f32 %v485_v14, %v461_v25 }
 0x62d   :  { %1189 = vtanh.f32 %v506_v7  ;;  %v1131_v29 = vmul.f32 -1.442695, %v486_v27  ;;  %v1132_v43 = vmul.f32 -1.442695, %v506_v7 }
 0x62f   :  { %1191 = vpow2.f32 %v1131_v29 }
 0x633   :  { %v1190_v11 = vpop.eup %1189 }
 0x634   :  { %549 = vrot.lane.b32.xlu1 %v1190_v11, %s1257_s13 }
 0x635   :  { %v1192_v17 = vpop.eup %1191 }
 0x636   :  { %v514_v30 = vadd.f32 1.0, %v1192_v17 }
 0x638   :  { %1193 = vrcp.f32 %v514_v30  ;;  %v527_v26 = vand.u32 2147483648, %v514_v30  ;;  %vm521_vm15 = vweird.f32 %v514_v30  ;;  %v525_v28 = vand.u32 2147483647, %v514_v30 }
 0x63a   :  { %v528_v36 = vor.u32 1.1754944e-38, %v527_v26  ;;  %vm526_vm2 = vcmp.eq.f32.partialorder %v525_v28, 8.507059e+37 }
 0x63e   :  { %v1194_v20 = vpop.eup %1193 }
 0x63f   :  { %v517_v31 = vmul.f32 %v1194_v20, %v514_v30  ;;  %vm522_vm14 = vweird.f32 %v1194_v20 }
 0x640   :  { %vm523_vm1 = vmor %vm521_vm15, %vm522_vm14 }
 0x641   :  { %v518_v32 = vsub.f32 1.0, %v517_v31 }
 0x643   :  { %v519_v33 = vmul.f32 %v1194_v20, %v518_v32 }
 0x645   :  { %v520_v24 = vadd.f32 %v1194_v20, %v519_v33 }
 0x647   :  { %v524_v34 = vsel %vm523_vm1, %v1194_v20, %v520_v24 }
 0x648   :  { %v529_v39 = vsel %vm526_vm2, %v528_v36, %v524_v34  ;;  %v670_v36 = vld [vmem:[#allocation2 + $0x8] sm:$0xc] }
 0x649   :  { %v547_v41 = vmul.f32 %v529_v39, %v1598_v62 }
 0x6a6   :  { %v550_v37 = vpop.permute.xlu1 %549 }
 0x6a7   :  { %v552_v40 = vmul.f32 %v550_v37, %v529_v39  ;;  %v674_v37 = vrot.slane %v670_v36, 2 }
 0x6a9   :  { %554 = vrot.lane.b32.xlu2 %v552_v40, %s1257_s13 }
 0x703   :  { %v555_v42 = vpop.permute.xlu2 %554 }
 0x704   :  { %v557_v35 = vadd.f32 %v555_v42, %v547_v41  ;;  %v669_v42 = vld [vmem:[#allocation2 + $0x18] sm:$0xc] }
 0x706   :  { %1195 = vtanh.f32 %v557_v35 }
 0x707   :  { %1197 = vpow2.f32 %v1132_v43 }
 0x70c   :  { %v1196_v38 = vpop.eup %1195 }
 0x70d   :  { %560 = vrot.lane.b32.xlu0 %v1196_v38, %s1257_s13  ;;  %v1198_v44 = vpop.eup %1197  ;;  %v673_v38 = vrot.slane %v669_v42, 2 }
 0x70e   :  { %v515_v45 = vadd.f32 1.0, %v1198_v44 }
 0x710   :  { %1199 = vrcp.f32 %v515_v45  ;;  %v542_v51 = vand.u32 2147483648, %v515_v45  ;;  %vm536_vm4 = vweird.f32 %v515_v45  ;;  %v540_v52 = vand.u32 2147483647, %v515_v45 }
 0x712   :  { %v543_v54 = vor.u32 1.1754944e-38, %v542_v51  ;;  %vm541_vm6 = vcmp.eq.f32.partialorder %v540_v52, 8.507059e+37 }
 0x716   :  { %v1200_v46 = vpop.eup %1199 }
 0x717   :  { %v532_v47 = vmul.f32 %v1200_v46, %v515_v45  ;;  %vm537_vm3 = vweird.f32 %v1200_v46 }
 0x718   :  { %vm538_vm5 = vmor %vm536_vm4, %vm537_vm3 }
 0x719   :  { %v533_v48 = vsub.f32 1.0, %v532_v47 }
 0x71b   :  { %v534_v49 = vmul.f32 %v1200_v46, %v533_v48 }
 0x71d   :  { %v535_v50 = vadd.f32 %v1200_v46, %v534_v49 }
 0x71f   :  { %v539_v53 = vsel %vm538_vm5, %v1200_v46, %v535_v50 }
 0x720   :  { %v544_v55 = vsel %vm541_vm6, %v543_v54, %v539_v53 }
 0x77f   :  { %v561_v56 = vpop.permute.xlu0 %560 }
 0x780   :  { %v563_v57 = vmul.f32 %v561_v56, %v544_v55 }
 0x782   :  { %564 = vst.msk [vmem:[#allocation3 + $0x6] sm:$0x3] %vm235_vm9, %v563_v57  ;;  %1133 = vmatmul.msk.f32.vlgmr.msrb.gmra.mxu2 %vm55_vm0, %v563_v57  ;;  %1134 = vmatmul.msk.f32.vlgmr.msrb.gmra.mxu3 %vm55_vm0, %v563_v57 }
 0x783   :  { %565 = vst.msk [vmem:[#allocation3 + $0x8] sm:$0x3] %vm237_vm10, %v563_v57 }
 0x805   :  { %v608_v59 = vpop.f32.mrf.mxu3  ;;  %v588_v62 = vpop.f32.mrf.mxu2 }
 0x806   :  { %v609_v60 = vadd.f32 %v608_v59, %v567_v58  ;;  %v589_v0 = vadd.f32 %v588_v62, %v566_v63 }
 0x808   :  { %1201 = vtanh.f32 %v609_v60  ;;  %v1135_v2 = vmul.f32 -1.442695, %v589_v0  ;;  %v1136_v22 = vmul.f32 -1.442695, %v609_v60 }
 0x80a   :  { %1203 = vpow2.f32 %v1135_v2 }
 0x80e   :  { %v1202_v61 = vpop.eup %1201 }
 0x80f   :  { %652 = vrot.lane.b32.xlu1 %v1202_v61, %s1257_s13 }
 0x810   :  { %v1204_v4 = vpop.eup %1203 }
 0x811   :  { %v617_v9 = vadd.f32 1.0, %v1204_v4 }
 0x813   :  { %1205 = vrcp.f32 %v617_v9  ;;  %v630_v16 = vand.u32 2147483648, %v617_v9  ;;  %vm624_vm8 = vweird.f32 %v617_v9  ;;  %v628_v18 = vand.u32 2147483647, %v617_v9 }
 0x815   :  { %v631_v21 = vor.u32 1.1754944e-38, %v630_v16  ;;  %vm629_vm12 = vcmp.eq.f32.partialorder %v628_v18, 8.507059e+37 }
 0x819   :  { %v1206_v10 = vpop.eup %1205 }
 0x81a   :  { %v620_v12 = vmul.f32 %v1206_v10, %v617_v9  ;;  %vm625_vm7 = vweird.f32 %v1206_v10 }
 0x81b   :  { %vm626_vm11 = vmor %vm624_vm8, %vm625_vm7 }
 0x81c   :  { %v621_v13 = vsub.f32 1.0, %v620_v12 }
 0x81e   :  { %v622_v15 = vmul.f32 %v1206_v10, %v621_v13 }
 0x820   :  { %v623_v6 = vadd.f32 %v1206_v10, %v622_v15 }
 0x822   :  { %v627_v19 = vsel %vm626_vm11, %v1206_v10, %v623_v6 }
 0x823   :  { %v632_v23 = vsel %vm629_vm12, %v631_v21, %v627_v19 }
 0x824   :  { %v650_v3 = vmul.f32 %v632_v23, %v557_v35 }
 0x881   :  { %v653_v8 = vpop.permute.xlu1 %652 }
 0x882   :  { %v655_v1 = vmul.f32 %v653_v8, %v632_v23  ;;  %v779_v23 = vld [vmem:[#allocation2 + $0x8] sm:$0x30] }
 0x884   :  { %657 = vrot.lane.b32.xlu2 %v655_v1, %s1257_s13  ;;  %v783_v1 = vrot.slane %v779_v23, 4 }
 0x8de   :  { %v658_v5 = vpop.permute.xlu2 %657 }
 0x8df   :  { %v660_v7 = vadd.f32 %v658_v5, %v650_v3 }
 0x8e1   :  { %1207 = vtanh.f32 %v660_v7 }
 0x8e2   :  { %1209 = vpow2.f32 %v1136_v22 }
 0x8e7   :  { %v1208_v11 = vpop.eup %1207 }
 0x8e8   :  { %663 = vrot.lane.b32.xlu0 %v1208_v11, %s1257_s13  ;;  %v1210_v14 = vpop.eup %1209  ;;  %v778_v11 = vld [vmem:[#allocation2 + $0x18] sm:$0x30] }
 0x8e9   :  { %v618_v25 = vadd.f32 1.0, %v1210_v14  ;;  %v782_v14 = vrot.slane %v778_v11, 4  ;;  %v1003_v11 = vld [vmem:[%s1715_s6 + $0x28] sm:$0xff] }
 0x8eb   :  { %1211 = vrcp.f32 %v618_v25  ;;  %v645_v31 = vand.u32 2147483648, %v618_v25  ;;  %vm639_vm14 = vweird.f32 %v618_v25  ;;  %v643_v32 = vand.u32 2147483647, %v618_v25 }
 0x8ed   :  { %v646_v24 = vor.u32 1.1754944e-38, %v645_v31  ;;  %vm644_vm1 = vcmp.eq.f32.partialorder %v643_v32, 8.507059e+37 }
 0x8f1   :  { %v1212_v27 = vpop.eup %1211 }
 0x8f2   :  { %v635_v29 = vmul.f32 %v1212_v27, %v618_v25  ;;  %vm640_vm13 = vweird.f32 %v1212_v27 }
 0x8f3   :  { %vm641_vm15 = vmor %vm639_vm14, %vm640_vm13 }
 0x8f4   :  { %v636_v17 = vsub.f32 1.0, %v635_v29 }
 0x8f6   :  { %v637_v30 = vmul.f32 %v1212_v27, %v636_v17 }
 0x8f8   :  { %v638_v20 = vadd.f32 %v1212_v27, %v637_v30 }
 0x8fa   :  { %v642_v33 = vsel %vm641_vm15, %v1212_v27, %v638_v20 }
 0x8fb   :  { %v647_v26 = vsel %vm644_vm1, %v646_v24, %v642_v33 }
 0x95a   :  { %v664_v28 = vpop.permute.xlu0 %663 }
 0x95b   :  { %v666_v34 = vmul.f32 %v664_v28, %v647_v26 }
 0x95d   :  { %667 = vst.msk [vmem:[#allocation3 + $0x8] sm:$0x3] %vm235_vm9, %v666_v34  ;;  %1137 = vmatmul.msk.f32.vlgmr.msrb.gmra.mxu0 %vm55_vm0, %v666_v34  ;;  %1138 = vmatmul.msk.f32.vlgmr.msrb.gmra.mxu1 %vm55_vm0, %v666_v34 }
 0x95e   :  { %668 = vst.msk [vmem:[#allocation3 + $0x6] sm:$0x3] %vm237_vm10, %v666_v34 }
 0x9da   :  { %v717_v39 = vpop.f32.mrf.mxu1  ;;  %v697_v35 = vpop.f32.mrf.mxu0 }
 0x9db   :  { %v718_v40 = vadd.f32 %v717_v39, %v674_v37  ;;  %v698_v43 = vadd.f32 %v697_v35, %v673_v38 }
 0x9dd   :  { %1213 = vtanh.f32 %v718_v40  ;;  %v1139_v44 = vmul.f32 -1.442695, %v698_v43  ;;  %v1140_v63 = vmul.f32 -1.442695, %v718_v40 }
 0x9df   :  { %1215 = vpow2.f32 %v1139_v44 }
 0x9e3   :  { %v1214_v41 = vpop.eup %1213 }
 0x9e4   :  { %761 = vrot.lane.b32.xlu1 %v1214_v41, %s1257_s13 }
 0x9e5   :  { %v1216_v45 = vpop.eup %1215 }
 0x9e6   :  { %v726_v46 = vadd.f32 1.0, %v1216_v45 }
 0x9e8   :  { %1217 = vrcp.f32 %v726_v46  ;;  %v739_v52 = vand.u32 2147483648, %v726_v46  ;;  %vm733_vm3 = vweird.f32 %v726_v46  ;;  %v737_v53 = vand.u32 2147483647, %v726_v46 }
 0x9ea   :  { %v740_v55 = vor.u32 1.1754944e-38, %v739_v52  ;;  %vm738_vm5 = vcmp.eq.f32.partialorder %v737_v53, 8.507059e+37 }
 0x9ee   :  { %v1218_v47 = vpop.eup %1217 }
 0x9ef   :  { %v729_v48 = vmul.f32 %v1218_v47, %v726_v46  ;;  %vm734_vm2 = vweird.f32 %v1218_v47 }
 0x9f0   :  { %vm735_vm4 = vmor %vm733_vm3, %vm734_vm2 }
 0x9f1   :  { %v730_v49 = vsub.f32 1.0, %v729_v48 }
 0x9f3   :  { %v731_v50 = vmul.f32 %v1218_v47, %v730_v49 }
 0x9f5   :  { %v732_v51 = vadd.f32 %v1218_v47, %v731_v50 }
 0x9f7   :  { %v736_v54 = vsel %vm735_vm4, %v1218_v47, %v732_v51 }
 0x9f8   :  { %v741_v57 = vsel %vm738_vm5, %v740_v55, %v736_v54 }
 0x9f9   :  { %v759_v59 = vmul.f32 %v741_v57, %v660_v7 }
 0xa56   :  { %v762_v56 = vpop.permute.xlu1 %761 }
 0xa57   :  { %v764_v58 = vmul.f32 %v762_v56, %v741_v57  ;;  %v888_v57 = vld [vmem:[#allocation2 + $0x8] sm:$0xc0] }
 0xa59   :  { %766 = vrot.lane.b32.xlu2 %v764_v58, %s1257_s13  ;;  %v892_v58 = vrot.slane %v888_v57, 6 }
 0xab3   :  { %v767_v60 = vpop.permute.xlu2 %766 }
 0xab4   :  { %v769_v61 = vadd.f32 %v767_v60, %v759_v59 }
 0xab6   :  { %1219 = vtanh.f32 %v769_v61 }
 0xab7   :  { %1221 = vpow2.f32 %v1140_v63 }
 0xabc   :  { %v1220_v62 = vpop.eup %1219 }
 0xabd   :  { %772 = vrot.lane.b32.xlu0 %v1220_v62, %s1257_s13  ;;  %v1222_v0 = vpop.eup %1221  ;;  %v887_v62 = vld [vmem:[#allocation2 + $0x18] sm:$0xc0] }
 0xabe   :  { %v727_v2 = vadd.f32 1.0, %v1222_v0  ;;  %v891_v0 = vrot.slane %v887_v62, 6 }
 0xac0   :  { %1223 = vrcp.f32 %v727_v2  ;;  %v754_v15 = vand.u32 2147483648, %v727_v2  ;;  %vm748_vm7 = vweird.f32 %v727_v2  ;;  %v752_v6 = vand.u32 2147483647, %v727_v2 }
 0xac2   :  { %v755_v18 = vor.u32 1.1754944e-38, %v754_v15  ;;  %vm753_vm11 = vcmp.eq.f32.partialorder %v752_v6, 8.507059e+37 }
 0xac6   :  { %v1224_v4 = vpop.eup %1223 }
 0xac7   :  { %v744_v9 = vmul.f32 %v1224_v4, %v727_v2  ;;  %vm749_vm6 = vweird.f32 %v1224_v4 }
 0xac8   :  { %vm750_vm8 = vmor %vm748_vm7, %vm749_vm6 }
 0xac9   :  { %v745_v10 = vsub.f32 1.0, %v744_v9 }
 0xacb   :  { %v746_v12 = vmul.f32 %v1224_v4, %v745_v10 }
 0xacd   :  { %v747_v13 = vadd.f32 %v1224_v4, %v746_v12 }
 0xacf   :  { %v751_v16 = vsel %vm750_vm8, %v1224_v4, %v747_v13 }
 0xad0   :  { %v756_v19 = vsel %vm753_vm11, %v755_v18, %v751_v16 }
 0xb2f   :  { %v773_v21 = vpop.permute.xlu0 %772 }
 0xb30   :  { %v775_v8 = vmul.f32 %v773_v21, %v756_v19 }
 0xb32   :  { %776 = vst.msk [vmem:[#allocation3 + $0xa] sm:$0x3] %vm235_vm9, %v775_v8  ;;  %1141 = vmatmul.msk.f32.vlgmr.msra.gmra.mxu2 %vm55_vm0, %v775_v8  ;;  %1142 = vmatmul.msk.f32.vlgmr.msra.gmra.mxu3 %vm55_vm0, %v775_v8 }
 0xb33   :  { %777 = vst.msk [vmem:[#allocation3 + $0x4] sm:$0x3] %vm237_vm10, %v775_v8 }
 0xbb5   :  { %v826_v3 = vpop.f32.mrf.mxu3  ;;  %v806_v22 = vpop.f32.mrf.mxu2 }
 0xbb6   :  { %v827_v5 = vadd.f32 %v826_v3, %v783_v1  ;;  %v807_v25 = vadd.f32 %v806_v22, %v782_v14 }
 0xbb8   :  { %1225 = vtanh.f32 %v827_v5  ;;  %v1143_v27 = vmul.f32 -1.442695, %v807_v25  ;;  %v1144_v38 = vmul.f32 -1.442695, %v827_v5  ;;  %v1005_v5 = vld [vmem:[%s1715_s6 + $0x38] sm:$0xff] }
 0xbb9   :  { %1024 = vmatpush.msrb.mxu2 %v1005_v5 }
 0xbba   :  { %1227 = vpow2.f32 %v1143_v27 }
 0xbbe   :  { %v1226_v7 = vpop.eup %1225 }
 0xbbf   :  { %870 = vrot.lane.b32.xlu1 %v1226_v7, %s1257_s13  ;;  %v1004_v7 = vld [vmem:[%s1715_s6 + $0x30] sm:$0xff] }
 0xbc0   :  { %v1228_v29 = vpop.eup %1227  ;;  %1025 = vmatpush.msrb.mxu2 %v1004_v7 }
 0xbc1   :  { %v835_v17 = vadd.f32 1.0, %v1228_v29 }
 0xbc2   :  { %1026 = vmatpush.msrb.mxu2 %v1003_v11 }
 0xbc3   :  { %1229 = vrcp.f32 %v835_v17  ;;  %v848_v24 = vand.u32 2147483648, %v835_v17  ;;  %vm842_vm13 = vweird.f32 %v835_v17  ;;  %v846_v26 = vand.u32 2147483647, %v835_v17 }
 0xbc5   :  { %v849_v34 = vor.u32 1.1754944e-38, %v848_v24  ;;  %vm847_vm15 = vcmp.eq.f32.partialorder %v846_v26, 8.507059e+37  ;;  %v998_v24 = vld [vmem:[%s1715_s6] sm:$0xff] }
 0xbc9   :  { %v1230_v30 = vpop.eup %1229 }
 0xbca   :  { %v838_v20 = vmul.f32 %v1230_v30, %v835_v17  ;;  %vm843_vm12 = vweird.f32 %v1230_v30 }
 0xbcb   :  { %vm844_vm14 = vmor %vm842_vm13, %vm843_vm12 }
 0xbcc   :  { %v839_v31 = vsub.f32 1.0, %v838_v20  ;;  %v1002_v20 = vld [vmem:[%s1715_s6 + $0x20] sm:$0xff] }
 0xbcd   :  { %1027 = vmatpush.msrb.mxu2 %v1002_v20 }
 0xbce   :  { %v840_v32 = vmul.f32 %v1230_v30, %v839_v31  ;;  %v1001_v31 = vld [vmem:[%s1715_s6 + $0x18] sm:$0xff] }
 0xbcf   :  { %1028 = vmatpush.msrb.mxu2 %v1001_v31 }
 0xbd0   :  { %v841_v33 = vadd.f32 %v1230_v30, %v840_v32  ;;  %v1000_v32 = vld [vmem:[%s1715_s6 + $0x10] sm:$0xff] }
 0xbd1   :  { %1029 = vmatpush.msrb.mxu2 %v1000_v32 }
 0xbd2   :  { %v845_v28 = vsel %vm844_vm14, %v1230_v30, %v841_v33  ;;  %v999_v33 = vld [vmem:[%s1715_s6 + $0x8] sm:$0xff] }
 0xbd3   :  { %v850_v37 = vsel %vm847_vm15, %v849_v34, %v845_v28  ;;  %1030 = vmatpush.msrb.mxu2 %v999_v33  ;;  %vm1039_vm15 = vcmask 31744  }
 0xbd4   :  { %v868_v40 = vmul.f32 %v850_v37, %v769_v61 }
 0xbd5   :  { %1031 = vmatpush.msrb.mxu2 %v998_v24 }
 0xc31   :  { %v871_v36 = vpop.permute.xlu1 %870 }
 0xc32   :  { %v873_v39 = vmul.f32 %v871_v36, %v850_v37 }
 0xc34   :  { %875 = vrot.lane.b32.xlu2 %v873_v39, %s1257_s13 }
 0xc8e   :  { %v876_v41 = vpop.permute.xlu2 %875 }
 0xc8f   :  { %v1646_v42 = vadd.f32 %v876_v41, %v868_v40 }
 0xc91   :  { %1231 = vtanh.f32 %v1646_v42 }
 0xc92   :  { %1233 = vpow2.f32 %v1144_v38 }
 0xc97   :  { %v1232_v35 = vpop.eup %1231 }
 0xc98   :  { %881 = vrot.lane.b32.xlu0 %v1232_v35, %s1257_s13  ;;  %v1234_v43 = vpop.eup %1233 }
 0xc99   :  { %v836_v44 = vadd.f32 1.0, %v1234_v43 }
 0xc9b   :  { %1235 = vrcp.f32 %v836_v44  ;;  %v863_v50 = vand.u32 2147483648, %v836_v44  ;;  %vm857_vm2 = vweird.f32 %v836_v44  ;;  %v861_v51 = vand.u32 2147483647, %v836_v44 }
 0xc9d   :  { %v864_v53 = vor.u32 1.1754944e-38, %v863_v50  ;;  %vm862_vm4 = vcmp.eq.f32.partialorder %v861_v51, 8.507059e+37 }
 0xca1   :  { %v1236_v45 = vpop.eup %1235 }
 0xca2   :  { %v853_v46 = vmul.f32 %v1236_v45, %v836_v44  ;;  %vm858_vm1 = vweird.f32 %v1236_v45 }
 0xca3   :  { %vm859_vm3 = vmor %vm857_vm2, %vm858_vm1  ;;  %vm1102_vm2 = vcmask 7168  }
 0xca4   :  { %v854_v47 = vsub.f32 1.0, %v853_v46  ;;  %v1152_v46 = vld [vmem:[%s1716_s7] ss:$0 sm:$0xff] }
 0xca6   :  { %v855_v48 = vmul.f32 %v1236_v45, %v854_v47 }
 0xca8   :  { %v856_v49 = vadd.f32 %v1236_v45, %v855_v48 }
 0xcaa   :  { %v860_v52 = vsel %vm859_vm3, %v1236_v45, %v856_v49 }
 0xcab   :  { %v865_v54 = vsel %vm862_vm4, %v864_v53, %v860_v52  ;;  %v1066_v53 = vlaneseq }
 0xd0a   :  { %v882_v55 = vpop.permute.xlu0 %881 }
 0xd0b   :  { %v884_v56 = vmul.f32 %v882_v55, %v865_v54  ;;  %v1067_v54 = vand.u32 127, %v1066_v53 }
 0xd0d   :  { %885 = vst.msk [vmem:[#allocation3 + $0xc] sm:$0x3] %vm235_vm9, %v884_v56  ;;  %1145 = vmatmul.msk.f32.vlgmr.msra.gmra.mxu0 %vm55_vm0, %v884_v56  ;;  %1146 = vmatmul.msk.f32.vlgmr.msra.gmra.mxu1 %vm55_vm0, %v884_v56 }
 0xd0e   :  { %886 = vst.msk [vmem:[#allocation3 + $0x2] sm:$0x3] %vm237_vm10, %v884_v56 }
 0xd8a   :  { %v935_v59 = vpop.f32.mrf.mxu1  ;;  %v915_v63 = vpop.f32.mrf.mxu0 }
 0xd8b   :  { %v936_v60 = vadd.f32 %v935_v59, %v892_v58  ;;  %v916_v2 = vadd.f32 %v915_v63, %v891_v0 }
 0xd8d   :  { %1237 = vtanh.f32 %v936_v60  ;;  %v1147_v4 = vmul.f32 -1.442695, %v916_v2  ;;  %v1148_v29 = vmul.f32 -1.442695, %v936_v60 }
 0xd8f   :  { %1239 = vpow2.f32 %v1147_v4 }
 0xd93   :  { %v1238_v61 = vpop.eup %1237 }
 0xd94   :  { %979 = vrot.lane.b32.xlu1 %v1238_v61, %s1257_s13 }
 0xd95   :  { %v1240_v9 = vpop.eup %1239 }
 0xd96   :  { %v944_v10 = vadd.f32 1.0, %v1240_v9 }
 0xd98   :  { %1241 = vrcp.f32 %v944_v10  ;;  %v957_v18 = vand.u32 2147483648, %v944_v10  ;;  %vm951_vm6 = vweird.f32 %v944_v10  ;;  %v955_v19 = vand.u32 2147483647, %v944_v10 }
 0xd9a   :  { %v958_v8 = vor.u32 1.1754944e-38, %v957_v18  ;;  %vm956_vm8 = vcmp.eq.f32.partialorder %v955_v19, 8.507059e+37 }
 0xd9e   :  { %v1242_v12 = vpop.eup %1241 }
 0xd9f   :  { %v947_v13 = vmul.f32 %v1242_v12, %v944_v10  ;;  %vm952_vm5 = vweird.f32 %v1242_v12 }
 0xda0   :  { %vm953_vm7 = vmor %vm951_vm6, %vm952_vm5 }
 0xda1   :  { %v948_v15 = vsub.f32 1.0, %v947_v13 }
 0xda3   :  { %v949_v6 = vmul.f32 %v1242_v12, %v948_v15 }
 0xda5   :  { %v950_v16 = vadd.f32 %v1242_v12, %v949_v6 }
 0xda7   :  { %v954_v21 = vsel %vm953_vm7, %v1242_v12, %v950_v16 }
 0xda8   :  { %v959_v1 = vsel %vm956_vm8, %v958_v8, %v954_v21 }
 0xda9   :  { %v977_v22 = vmul.f32 %v959_v1, %v1646_v42 }
 0xe06   :  { %v980_v23 = vpop.permute.xlu1 %979 }
 0xe07   :  { %v982_v3 = vmul.f32 %v980_v23, %v959_v1 }
 0xe09   :  { %984 = vrot.lane.b32.xlu2 %v982_v3, %s1257_s13 }
 0xe63   :  { %v985_v14 = vpop.permute.xlu2 %984 }
 0xe64   :  { %v987_v25 = vadd.f32 %v985_v14, %v977_v22 }
 0xe66   :  { %1243 = vtanh.f32 %v987_v25 }
 0xe67   :  { %1245 = vpow2.f32 %v1148_v29 }
 0xe6c   :  { %v1244_v27 = vpop.eup %1243 }
 0xe6d   :  { %990 = vrot.lane.b32.xlu0 %v1244_v27, %s1257_s13  ;;  %v1246_v17 = vpop.eup %1245 }
 0xe6e   :  { %v945_v30 = vadd.f32 1.0, %v1246_v17 }
 0xe70   :  { %1247 = vrcp.f32 %v945_v30  ;;  %v972_v39 = vand.u32 2147483648, %v945_v30  ;;  %vm966_vm12 = vweird.f32 %v945_v30  ;;  %v970_v40 = vand.u32 2147483647, %v945_v30 }
 0xe72   :  { %v973_v42 = vor.u32 1.1754944e-38, %v972_v39  ;;  %vm971_vm14 = vcmp.eq.f32.partialorder %v970_v40, 8.507059e+37 }
 0xe76   :  { %v1248_v26 = vpop.eup %1247 }
 0xe77   :  { %v962_v28 = vmul.f32 %v1248_v26, %v945_v30  ;;  %vm967_vm11 = vweird.f32 %v1248_v26 }
 0xe78   :  { %vm968_vm13 = vmor %vm966_vm12, %vm967_vm11 }
 0xe79   :  { %v963_v34 = vsub.f32 1.0, %v962_v28 }
 0xe7b   :  { %v964_v36 = vmul.f32 %v1248_v26, %v963_v34 }
 0xe7d   :  { %v965_v37 = vadd.f32 %v1248_v26, %v964_v36 }
 0xe7f   :  { %v969_v41 = vsel %vm968_vm13, %v1248_v26, %v965_v37 }
 0xe80   :  { %v974_v35 = vsel %vm971_vm14, %v973_v42, %v969_v41 }
 0xedf   :  { %v991_v38 = vpop.permute.xlu0 %990 }
 0xee0   :  { %v993_v43 = vmul.f32 %v991_v38, %v974_v35 }
 0xee2   :  { %994 = vst.msk [vmem:[#allocation3 + $0xe] sm:$0x3] %vm235_vm9, %v993_v43 }
 0xee3   :  { %995 = vst.msk [vmem:[#allocation3] sm:$0x3] %vm237_vm10, %v993_v43 }
 0xee9   :  { %v997_v45 = vld [vmem:[#allocation3 + $0x8] sm:$0xff] }
 0xeea   :  { %v996_v44 = vld [vmem:[#allocation3] sm:$0xff] }
 0xeeb   :  { %1149 = vmatmul.msk.f32.vlgmr.msrb.gmra.mxu2 %vm55_vm0, %v996_v44 }
 0xef3   :  { %1150 = vmatmul.msk.f32.gmra.mxu2 %vm55_vm0, %v997_v45 }
 0xf6e   :  { %v1033_v47 = vpop.f32.mrf.mxu2 }
 0xf6f   :  { %v1034_v48 = vadd.f32 %v1152_v46, %v1033_v47 }
 0xf71   :  { %v1040_v49 = vsel %vm1039_vm15, %v1034_v48, -inf }
 0xf72   :  { %1041 = vmax.xlane.f32.xlu1 %v1040_v49 }
 0xf76   :  { %v1036_v50 = vpop.f32.mrf.mxu2 }
 0xf77   :  { %v1037_v51 = vadd.f32 %v1152_v46, %v1036_v50 }
 0xf79   :  { %v1043_v52 = vsel %vm1039_vm15, %v1037_v51, -inf }
 0xf7a   :  { %1044 = vmax.xlane.f32.xlu2 %v1043_v52 }
 0xfe5   :  { %v1042_v55 = vpop.xlane.xlu1 %1041 }
 0xfe6   :  { %v1046_v56 = vsub.f32 %v1034_v48, %v1042_v55  ;;  %vm1068_vm0 = vcmp.ge.f32.partialorder %v1034_v48, %v1042_v55 }
 0xfe7   :  { %v1070_v57 = vsel %vm1068_vm0, %v1067_v54, 4 }
 0xfe8   :  { %v1048_v58 = vmul.f32 1.442695, %v1046_v56  ;;  %v1072_v59 = vsel %vm1039_vm15, %v1070_v57, 2147483647 }
 0xfe9   :  { %v1074_v60 = vshra.s32 %v1072_v59, 16  ;;  %v1073_v16 = vand.u32 65535, %v1072_v59 }
 0xfea   :  { %1249 = vpow2.f32 %v1048_v58 }
 0xfeb   :  { %v1076_v61 = vcvt.s32.f32 %v1074_v60  ;;  %v1075_v19 = vcvt.s32.f32 %v1073_v16 }
 0xfed   :  { %v1045_v62 = vpop.xlane.xlu2 %1044  ;;  %1077 = vmin.xlane.f32.xlu0 %v1076_v61 }
 0xfee   :  { %v1047_v63 = vsub.f32 %v1037_v51, %v1045_v62  ;;  %vm1069_vm9 = vcmp.ge.f32.partialorder %v1037_v51, %v1045_v62 }
 0xfef   :  { %v1071_v0 = vsel %vm1069_vm9, %v1067_v54, 4 }
 0xff0   :  { %v1250_v2 = vpop.eup %1249  ;;  %v1050_v4 = vmul.f32 1.442695, %v1047_v63  ;;  %v1087_v9 = vsel %vm1039_vm15, %v1071_v0, 2147483647 }
 0xff1   :  { %v1052_v10 = vsel %vm1039_vm15, %v1250_v2, 0.0  ;;  %v1089_v12 = vshra.s32 %v1087_v9, 16  ;;  %v1088_v8 = vand.u32 65535, %v1087_v9 }
 0xff2   :  { %1053 = vadd.xlane.f32.xlu1 %v1052_v10  ;;  %1251 = vpow2.f32 %v1050_v4 }
 0xff3   :  { %v1091_v13 = vcvt.s32.f32 %v1089_v12  ;;  %v1090_v3 = vcvt.s32.f32 %v1088_v8 }
 0xff5   :  { %1092 = vmin.xlane.f32.xlu2 %v1091_v13 }
 0xff8   :  { %v1252_v15 = vpop.eup %1251 }
 0xff9   :  { %v1055_v6 = vsel %vm1039_vm15, %v1252_v15, 0.0 }
 0xffd   :  { %1056 = vadd.xlane.f32.xlu2 %v1055_v6 }
0x1060   :  { %v1078_v18 = vpop.xlane.xlu0 %1077 }
0x1061   :  { %vm1079_vm10 = vcmp.eq.f32.partialorder %v1076_v61, %v1078_v18  ;;  %v1084_v17 = vcvt.f32.s32 %v1078_v18 }
0x1062   :  { %v1080_v21 = vsel %vm1079_vm10, %v1075_v19, inf }
0x1063   :  { %1081 = vmin.xlane.f32.xlu0 %v1080_v21  ;;  %v1085_v20 = vshll.u32 %v1084_v17, 16 }
0x1065   :  { %v1054_v23 = vpop.xlane.xlu1 %1053 }
0x1066   :  { %1253 = vlog2.f32 %v1054_v23 }
0x1068   :  { %v1093_v1 = vpop.xlane.xlu2 %1092 }
0x1069   :  { %vm1094_vm1 = vcmp.eq.f32.partialorder %v1091_v13, %v1093_v1  ;;  %v1099_v33 = vcvt.f32.s32 %v1093_v1 }
0x106a   :  { %v1095_v5 = vsel %vm1094_vm1, %v1090_v3, inf }
0x106b   :  { %1096 = vmin.xlane.f32.xlu1 %v1095_v5  ;;  %v1100_v26 = vshll.u32 %v1099_v33, 16 }
0x106c   :  { %v1254_v7 = vpop.eup %1253 }
0x106d   :  { %v1059_v11 = vmul.f32 0.6931472, %v1254_v7 }
0x106f   :  { %v1062_v22 = vsub.f32 %v1046_v56, %v1059_v11 }
0x1070   :  { %v1057_v14 = vpop.xlane.xlu2 %1056 }
0x1071   :  { %1064 = vst.msk [vmem:[%s1717_s8] sm:$0xff] %vm1039_vm15, %v1062_v22  ;;  %1255 = vlog2.f32 %v1057_v14 }
0x1077   :  { %v1256_v25 = vpop.eup %1255 }
0x1078   :  { %v1061_v27 = vmul.f32 0.6931472, %v1256_v25 }
0x107a   :  { %v1063_v29 = vsub.f32 %v1047_v63, %v1061_v27 }
0x107c   :  { %1065 = vst.msk [vmem:[%s1717_s8 + $0x8] sm:$0xff] %vm1039_vm15, %v1063_v29 }
0x10d6   :  { %v1082_v30 = vpop.xlane.xlu0 %1081 }
0x10d7   :  { %v1083_v31 = vcvt.f32.s32 %v1082_v30 }
0x10d9   :  { %v1086_v32 = vadd.s32 %v1085_v20, %v1083_v31 }
0x10db   :  { %1103 = vst.msk [vmem:[%s1718_s9] sm:$0xff] %vm1102_vm2, %v1086_v32 }
0x10de   :  { %v1097_v24 = vpop.xlane.xlu1 %1096 }
0x10df   :  { %v1098_v28 = vcvt.f32.s32 %v1097_v24 }
0x10e1   :  { %v1101_v34 = vadd.s32 %v1100_v26, %v1098_v28 }
0x10e3   :  { %1104 = vst.msk [vmem:[%s1718_s9 + $0x8] sm:$0xff] %vm1102_vm2, %v1101_v34 }

</bundles_post_ra>
